<compile_context>
chip_gen: v6e
topology: v6e:2x2x1
jax: 0.10.0
libtpu: 0.0.40
codegen_flags: <defaults>
</compile_context>

<pallas_src>
import jax
import jax.numpy as jnp
from jax.experimental import pallas as pl
from jax.experimental.pallas import tpu as pltpu


NPASS = 4  # 0: feature sums, 1: logit max, 2: softmax denom, 3: emit


def high_agg_kernel(dcol_ref, drow_ref, nn_ref, invc_ref,
                    wsrc_ref, psrc_ref, pdst_ref, bcast_ref, hmix_ref,
                    whigh_ref, bhigh_ref,
                    hout_ref, alpha_ref,
                    hmean_ref, hacc_ref, m_ref, l_ref):
    p = pl.program_id(0)                   # pass index (slow axis)
    e = pl.program_id(1)                   # E-tile index (fast axis)
    last_e = pl.num_programs(1) - 1
    H = invc_ref.shape[0]                  # number of high-order nodes
    te = dcol_ref.shape[0]                 # edges per tile

    # Per-tile one-hot segment matrices, built from the edge->group indices.
    # Padded edges carry group id == H -> all-zero rows/cols (no-ops).
    dcol = dcol_ref[...]                                           # [te, 1] i32
    drow = drow_ref[0]                                             # [1, te] i32
    seg_eh = (jax.lax.broadcasted_iota(jnp.int32, (te, H), 1) == dcol
              ).astype(jnp.float32)                                # gathers
    seg_he = (jax.lax.broadcasted_iota(jnp.int32, (H, te), 0) == drow
              ).astype(jnp.bfloat16)                               # scatters

    nn_bf = nn_ref[...].astype(jnp.bfloat16)                       # [te, D]

    def raw_logits():
        # exact one-hot gather of the per-group mean for every edge
        hme = jnp.dot(seg_eh, hmean_ref[...],
                      preferred_element_type=jnp.float32)          # [te, D]
        # fused logits: (lin_dst(h_mean)*att_src).sum(-1) + (lin_src(x)*att_dst).sum(-1)
        # with the weight algebra folded into p_src / p_dst in the wrapper.
        a = (jnp.dot(hme.astype(jnp.bfloat16), psrc_ref[...],
                     preferred_element_type=jnp.float32)
             + jnp.dot(nn_bf, pdst_ref[...],
                       preferred_element_type=jnp.float32))        # [te, C]
        return jnp.where(a >= 0.0, a, 0.2 * a)                     # leaky_relu(0.2)

    def shifted_exp():
        a = raw_logits()
        # per-edge gather of the per-group max (m_ref is [1, H])
        m_e = jnp.sum(seg_eh * m_ref[...], axis=1, keepdims=True)   # [te, 1]
        return jnp.exp(a - m_e)

    # ---- pass 0: per-group feature sums (scatter-mean numerator) -----------
    @pl.when(p == 0)
    def _():
        @pl.when(e == 0)
        def _():
            hacc_ref[...] = jnp.zeros_like(hacc_ref)
        hacc_ref[...] += jnp.dot(seg_he, nn_bf,
                                 preferred_element_type=jnp.float32)

    # ---- pass 1: finalize mean; per-group running max of the logits --------
    @pl.when(p == 1)
    def _():
        @pl.when(e == 0)
        def _():
            hmean_ref[...] = hacc_ref[...] * invc_ref[...]
            # 0-floor is a valid per-group shift (softmax is shift-invariant)
            # and keeps the padded alpha lanes exact/finite.
            m_ref[...] = jnp.zeros_like(m_ref)
        a = raw_logits()
        rmax = jnp.max(a, axis=1, keepdims=True)                   # [te, 1]
        masked = jnp.where(seg_eh > 0.5, rmax, -1e30)              # [te, H]
        m_ref[...] = jnp.maximum(m_ref[...],
                                 jnp.max(masked, axis=0, keepdims=True))

    # ---- pass 2: softmax denominators with the final per-group max ---------
    @pl.when(p == 2)
    def _():
        @pl.when(e == 0)
        def _():
            l_ref[...] = jnp.zeros_like(l_ref)
        ea = shifted_exp()                                         # [te, C]
        l_ref[...] += jnp.dot(seg_he, ea.astype(jnp.bfloat16),
                              preferred_element_type=jnp.float32)  # [H, C]

    # ---- pass 3: alpha, head-weighted mean, scatter-sum, final Linear ------
    @pl.when(p == 3)
    def _():
        @pl.when(e == 0)
        def _():
            hacc_ref[...] = jnp.zeros_like(hacc_ref)
        ea = shifted_exp()                                         # [te, C]
        den = jnp.dot(seg_eh, l_ref[...],
                      preferred_element_type=jnp.float32)          # [te, C]
        alpha = ea * pl.reciprocal(den + 1e-16, approx=True)
        alpha_ref[...] = alpha                     # lane-dense [te, 128] store

        h_node = jnp.dot(nn_bf, wsrc_ref[...],
                         preferred_element_type=jnp.float32)       # [te, heads*D]
        a_b = jnp.dot(alpha.astype(jnp.bfloat16), bcast_ref[...],
                      preferred_element_type=jnp.float32)          # [te, heads*D]
        h_w = (h_node * a_b).astype(jnp.bfloat16)
        h_red = jnp.dot(h_w, hmix_ref[...],
                        preferred_element_type=jnp.float32)        # [te, D], mean over heads folded
        hacc_ref[...] += jnp.dot(seg_he, h_red.astype(jnp.bfloat16),
                                 preferred_element_type=jnp.float32)

        @pl.when(e == last_e)
        def _():
            hout_ref[...] = (jnp.dot(hacc_ref[...].astype(jnp.bfloat16),
                                     whigh_ref[...],
                                     preferred_element_type=jnp.float32)
                             + bhigh_ref[...])


def high_agg_pallas(n_features, src, dst, w_src, w_dst, att_src, att_dst,
                    w_high, b_high, *, heads, embed_dim, num_high, tile_e=512):
    """HighAgg.forward.  w_src/w_dst = lin_src.weight.T / lin_dst.weight.T
    ([D, heads*D]); att_* are [1, heads, D]; w_high = high_weight.weight.T
    ([D, D]); b_high is [1, D].  Returns (h_features [num_high, D],
    alpha [E, heads])."""
    D = embed_dim
    H = num_high
    hd = heads * D
    C = max(128, -(-heads // 128) * 128)          # lane-dense alpha width
    E = int(src.shape[0])
    te = int(tile_e)
    assert te % 8 == 0, "tile_e must be a multiple of 8 sublanes"

    # ---- wrapper glue: graph gather/indices + parameter algebra only -------
    nn_feat = n_features[src].astype(jnp.float32)                  # [E, D]
    dst = dst.astype(jnp.int32)

    e_pad = -(-E // te) * te
    pad = e_pad - E
    nn_p = jnp.pad(nn_feat, ((0, pad), (0, 0)))                    # padded rows = 0
    dst_p = jnp.pad(dst, (0, pad), constant_values=H)              # padded group = H
    dcol = dst_p.reshape(e_pad, 1)                                 # sublane-oriented ids
    drow = dst_p.reshape(e_pad // te, 1, te)                       # lane-oriented ids

    cnt = jax.ops.segment_sum(jnp.ones((E,), jnp.float32), dst, num_segments=H)
    inv_cnt = (1.0 / jnp.maximum(cnt, 1.0)).reshape(H, 1)

    # block-diagonal att matrices (padded to C columns) fused with the
    # lin weights: logits = h_mean_e @ p_src + x_e @ p_dst
    A_src = jnp.zeros((hd, C), jnp.float32)
    A_dst = jnp.zeros((hd, C), jnp.float32)
    for h in range(heads):
        A_src = A_src.at[h * D:(h + 1) * D, h].set(att_src[0, h])
        A_dst = A_dst.at[h * D:(h + 1) * D, h].set(att_dst[0, h])
    p_src = (w_dst @ A_src).astype(jnp.bfloat16)                   # [D, C]
    p_dst = (w_src @ A_dst).astype(jnp.bfloat16)                   # [D, C]

    # alpha -> heads*D broadcast, and head-mean with 1/heads folded in
    bcast = jnp.zeros((C, hd), jnp.float32)
    for h in range(heads):
        bcast = bcast.at[h, h * D:(h + 1) * D].set(1.0)
    bcast = bcast.astype(jnp.bfloat16)                             # [C, heads*D]
    hmix = (jnp.tile(jnp.eye(D, dtype=jnp.float32), (heads, 1)) / heads
            ).astype(jnp.bfloat16)                                 # [heads*D, D]

    wsrc_bf = w_src.astype(jnp.bfloat16)
    whigh_bf = w_high.astype(jnp.bfloat16)
    b_high2 = b_high.reshape(1, D).astype(jnp.float32)

    n_t = e_pad // te
    grid = (NPASS, n_t)

    full = lambda shape: pl.BlockSpec(shape, lambda p, e: (0,) * len(shape))
    etile = lambda shape: pl.BlockSpec(
        shape, lambda p, e: (e,) + (0,) * (len(shape) - 1))

    flops = int(
        2 * e_pad * H * D
        + 3 * (2 * e_pad * H * D + 4 * e_pad * D * C)
        + 4 * e_pad * H * C
        + 2 * e_pad * (D * hd + C * hd + hd * D + H * D)
        + 2 * H * D * D)
    cost = pl.CostEstimate(
        flops=flops,
        transcendentals=int(2 * e_pad * C),
        bytes_accessed=int(4 * (NPASS * e_pad * (D + 2) + e_pad * C
                                + H * D + D * hd + 2 * D * C + C * hd
                                + hd * D + D * D)))

    h_out, alpha_out = pl.pallas_call(
        high_agg_kernel,
        grid=grid,
        in_specs=[
            etile((te, 1)),                 # edge -> group ids (column)
            etile((1, 1, te)),              # edge -> group ids (row)
            etile((te, D)),                 # gathered node features
            full((H, 1)),                   # 1 / counts
            full((D, hd)),                  # lin_src weight
            full((D, C)),                   # W_dst @ A_src
            full((D, C)),                   # W_src @ A_dst
            full((C, hd)),                  # alpha broadcast
            full((hd, D)),                  # head mean (1/heads folded)
            full((D, D)),                   # high_weight
            full((1, D)),                   # high_weight bias
        ],
        out_specs=[
            pl.BlockSpec((H, D), lambda p, e: (0, 0)),
            pl.BlockSpec((te, C), lambda p, e: (e, 0)),
        ],
        out_shape=[
            jax.ShapeDtypeStruct((H, D), jnp.float32),
            jax.ShapeDtypeStruct((e_pad, C), jnp.float32),
        ],
        scratch_shapes=[
            pltpu.VMEM((H, D), jnp.float32),   # h_mean
            pltpu.VMEM((H, D), jnp.float32),   # per-group accumulator
            pltpu.VMEM((1, H), jnp.float32),   # per-group logit max
            pltpu.VMEM((H, C), jnp.float32),   # per-group softmax denominators
        ],
        compiler_params=pltpu.CompilerParams(
            dimension_semantics=("arbitrary", "arbitrary"),
            vmem_limit_bytes=48 * 1024 * 1024),
        cost_estimate=cost,
    )(dcol, drow, nn_p, inv_cnt, wsrc_bf, p_src, p_dst, bcast, hmix,
      whigh_bf, b_high2)

    return h_out, alpha_out[:E, :heads]


# ---------------------------- pure-JAX reference -----------------------------
def high_agg_reference(n_features, src, dst, w_src, w_dst, att_src, att_dst,
                       w_high, b_high, *, heads, embed_dim, num_high):
    D, H = embed_dim, num_high
    nn_feat = n_features[src]
    cnt = jax.ops.segment_sum(jnp.ones_like(dst, jnp.float32), dst, num_segments=H)
    h_mean = (jax.ops.segment_sum(nn_feat, dst, num_segments=H)
              / jnp.maximum(cnt, 1.0)[:, None])
    h_high_e = h_mean[dst]
    h_node = (nn_feat @ w_src).reshape(-1, heads, D)
    h_high = (h_high_e @ w_dst).reshape(-1, heads, D)
    alpha = (h_high * att_src).sum(-1) + (h_node * att_dst).sum(-1)
    alpha = jnp.where(alpha >= 0, alpha, 0.2 * alpha)
    amax = jax.ops.segment_max(alpha, dst, num_segments=H)[dst]
    ea = jnp.exp(alpha - amax)
    denom = jax.ops.segment_sum(ea, dst, num_segments=H)[dst]
    alpha = ea / (denom + 1e-16)
    hn = (h_node * alpha[..., None]).mean(axis=1)
    hf = jax.ops.segment_sum(hn, dst, num_segments=H) @ w_high + b_high
    return hf, alpha


if __name__ == "__main__":
    # small synthetic problem: N nodes, E node->high edges, H high-order nodes
    N, E, H, D, heads = 8, 16, 4, 32, 4

    key = jax.random.PRNGKey(0)
    ks = jax.random.split(key, 9)

    n_features = jax.random.normal(ks[0], (N, D), jnp.float32)
    src = jax.random.randint(ks[1], (E,), 0, N)                 # n2h_graph[0]
    dst = jax.random.randint(ks[2], (E,), 0, H)                 # n2h_graph[1]

    def glorot(k, shape, fan_in, fan_out):
        lim = (6.0 / (fan_in + fan_out)) ** 0.5
        return jax.random.uniform(k, shape, jnp.float32, -lim, lim)

    w_src = glorot(ks[3], (D, heads * D), D, heads * D)         # lin_src.weight.T
    w_dst = glorot(ks[4], (D, heads * D), D, heads * D)         # lin_dst.weight.T
    att_src = glorot(ks[5], (1, heads, D), heads, D)
    att_dst = glorot(ks[6], (1, heads, D), heads, D)
    w_high = glorot(ks[7], (D, D), D, D)                        # high_weight.weight.T
    b_high = jax.random.uniform(ks[8], (1, D), jnp.float32, -0.1, 0.1)

    h_out, alpha_out = high_agg_pallas(
        n_features, src, dst, w_src, w_dst, att_src, att_dst, w_high, b_high,
        heads=heads, embed_dim=D, num_high=H, tile_e=8)         # 2 E-tiles
    jax.block_until_ready((h_out, alpha_out))

    h_ref, alpha_ref = high_agg_reference(
        n_features, src, dst, w_src, w_dst, att_src, att_dst, w_high, b_high,
        heads=heads, embed_dim=D, num_high=H)

    err_h = float(jnp.max(jnp.abs(h_out - h_ref)))
    err_a = float(jnp.max(jnp.abs(alpha_out - alpha_ref)))
    assert err_h < 5e-2, f"h_features mismatch (max abs err {err_h})"
    assert err_a < 2e-2, f"alpha mismatch (max abs err {err_a})"

    print("KERNEL_OK")
</pallas_src>

<mosaic_0001>
module attributes {stable_mosaic.version = 11 : i64} {
  func.func @high_agg_kernel(%arg0: i32, %arg1: i32, %arg2: memref<8x1xi32, #tpu.memory_space<vmem>>, %arg3: memref<1x1x8xi32, #tpu.memory_space<vmem>>, %arg4: memref<8x32xf32, #tpu.memory_space<vmem>>, %arg5: memref<4x1xf32, #tpu.memory_space<vmem>>, %arg6: memref<32x128xbf16, #tpu.memory_space<vmem>>, %arg7: memref<32x128xbf16, #tpu.memory_space<vmem>>, %arg8: memref<32x128xbf16, #tpu.memory_space<vmem>>, %arg9: memref<128x128xbf16, #tpu.memory_space<vmem>>, %arg10: memref<128x32xbf16, #tpu.memory_space<vmem>>, %arg11: memref<32x32xbf16, #tpu.memory_space<vmem>>, %arg12: memref<1x32xf32, #tpu.memory_space<vmem>>, %arg13: memref<4x32xf32, #tpu.memory_space<vmem>>, %arg14: memref<8x128xf32, #tpu.memory_space<vmem>>, %arg15: memref<4x32xf32, #tpu.memory_space<vmem>>, %arg16: memref<4x32xf32, #tpu.memory_space<vmem>>, %arg17: memref<1x4xf32, #tpu.memory_space<vmem>>, %arg18: memref<4x128xf32, #tpu.memory_space<vmem>>) attributes {dimension_semantics = [#tpu.dimension_semantics<arbitrary>, #tpu.dimension_semantics<arbitrary>], iteration_bounds = array<i64: 4, 2>, scalar_prefetch = 0 : i64, scratch_operands = 4 : i64, tpu.core_type = #tpu.core_type<tc>, window_params = [{transform_indices = @transform_0, window_bounds = array<i64: 8, 1>}, {transform_indices = @transform_1, window_bounds = array<i64: 1, 1, 8>}, {transform_indices = @transform_2, window_bounds = array<i64: 8, 32>}, {pipeline_mode = #tpu.pipeline_mode<synchronous>, transform_indices = @transform_3, window_bounds = array<i64: 4, 1>}, {pipeline_mode = #tpu.pipeline_mode<synchronous>, transform_indices = @transform_4, window_bounds = array<i64: 32, 128>}, {pipeline_mode = #tpu.pipeline_mode<synchronous>, transform_indices = @transform_5, window_bounds = array<i64: 32, 128>}, {pipeline_mode = #tpu.pipeline_mode<synchronous>, transform_indices = @transform_6, window_bounds = array<i64: 32, 128>}, {pipeline_mode = #tpu.pipeline_mode<synchronous>, transform_indices = @transform_7, window_bounds = array<i64: 128, 128>}, {pipeline_mode = #tpu.pipeline_mode<synchronous>, transform_indices = @transform_8, window_bounds = array<i64: 128, 32>}, {pipeline_mode = #tpu.pipeline_mode<synchronous>, transform_indices = @transform_9, window_bounds = array<i64: 32, 32>}, {pipeline_mode = #tpu.pipeline_mode<synchronous>, transform_indices = @transform_10, window_bounds = array<i64: 1, 32>}, {pipeline_mode = #tpu.pipeline_mode<synchronous>, transform_indices = @transform_11, window_bounds = array<i64: 4, 32>}, {transform_indices = @transform_12, window_bounds = array<i64: 8, 128>}]} {
    %c0 = arith.constant 0 : index
    %c0_0 = arith.constant 0 : index
    %0 = vector.load %arg2[%c0, %c0_0] : memref<8x1xi32, #tpu.memory_space<vmem>>, vector<8x1xi32>
    %c0_1 = arith.constant 0 : index
    %c0_2 = arith.constant 0 : index
    %c0_3 = arith.constant 0 : index
    %1 = vector.load %arg3[%c0_1, %c0_2, %c0_3] : memref<1x1x8xi32, #tpu.memory_space<vmem>>, vector<1x1x8xi32>
    %2 = vector.shape_cast %1 : vector<1x1x8xi32> to vector<1x8xi32>
    %3 = tpu.iota {dimensions = array<i32: 1>} : vector<8x4xi32>
    %4 = vector.broadcast %0 : vector<8x1xi32> to vector<8x4xi32>
    %5 = arith.cmpi eq, %3, %4 : vector<8x4xi32>
    %6 = arith.extui %5 : vector<8x4xi1> to vector<8x4xi32>
    %7 = arith.sitofp %6 : vector<8x4xi32> to vector<8x4xf32>
    %8 = tpu.iota {dimensions = array<i32: 0>} : vector<4x8xi32>
    %9 = vector.broadcast %2 : vector<1x8xi32> to vector<4x8xi32>
    %10 = arith.cmpi eq, %8, %9 : vector<4x8xi32>
    %11 = arith.extui %10 : vector<4x8xi1> to vector<4x8xi32>
    %12 = arith.sitofp %11 : vector<4x8xi32> to vector<4x8xf32>
    %13 = arith.truncf %12 : vector<4x8xf32> to vector<4x8xbf16>
    %c0_4 = arith.constant 0 : index
    %c0_5 = arith.constant 0 : index
    %14 = vector.load %arg4[%c0_4, %c0_5] : memref<8x32xf32, #tpu.memory_space<vmem>>, vector<8x32xf32>
    %15 = arith.truncf %14 : vector<8x32xf32> to vector<8x32xbf16>
    %c0_i32 = arith.constant 0 : i32
    %16 = arith.cmpi eq, %arg0, %c0_i32 : i32
    %17 = arith.extui %16 : i1 to i32
    %c0_i32_6 = arith.constant 0 : i32
    %18 = arith.cmpi ne, %17, %c0_i32_6 : i32
    scf.if %18 {
      %c0_i32_10 = arith.constant 0 : i32
      %28 = arith.cmpi eq, %arg1, %c0_i32_10 : i32
      %29 = arith.extui %28 : i1 to i32
      %c0_i32_11 = arith.constant 0 : i32
      %30 = arith.cmpi ne, %29, %c0_i32_11 : i32
      scf.if %30 {
        %cst_16 = arith.constant 0.000000e+00 : f32
        %35 = vector.broadcast %cst_16 : f32 to vector<4x32xf32>
        %c0_17 = arith.constant 0 : index
        %c0_18 = arith.constant 0 : index
        %36 = vector.load %arg16[%c0_17, %c0_18] : memref<4x32xf32, #tpu.memory_space<vmem>>, vector<4x32xf32>
        tpu.vector_store %arg16[%c0_17, %c0_18], %35 {strides = array<i32>} : memref<4x32xf32, #tpu.memory_space<vmem>>, vector<4x32xf32>,
      } else {
      }
      %c0_12 = arith.constant 0 : index
      %c0_13 = arith.constant 0 : index
      %31 = vector.load %arg16[%c0_12, %c0_13] : memref<4x32xf32, #tpu.memory_space<vmem>>, vector<4x32xf32>
      %cst = arith.constant dense<0.000000e+00> : vector<4x32xf32>
      %32 = tpu.matmul %13, %15, %cst {dimension_numbers = #tpu.dot_dimension_numbers<[1], [0], [0], [1], [0, 0, 1, 1], [], []>} : vector<4x8xbf16>, vector<8x32xbf16>, vector<4x32xf32> -> vector<4x32xf32>
      %33 = arith.addf %31, %32 : vector<4x32xf32>
      %c0_14 = arith.constant 0 : index
      %c0_15 = arith.constant 0 : index
      %34 = vector.load %arg16[%c0_14, %c0_15] : memref<4x32xf32, #tpu.memory_space<vmem>>, vector<4x32xf32>
      tpu.vector_store %arg16[%c0_14, %c0_15], %33 {strides = array<i32>} : memref<4x32xf32, #tpu.memory_space<vmem>>, vector<4x32xf32>,
    } else {
    }
    %c1_i32 = arith.constant 1 : i32
    %19 = arith.cmpi eq, %arg0, %c1_i32 : i32
    %20 = arith.extui %19 : i1 to i32
    %c0_i32_7 = arith.constant 0 : i32
    %21 = arith.cmpi ne, %20, %c0_i32_7 : i32
    scf.if %21 {
      %c0_i32_10 = arith.constant 0 : i32
      %28 = arith.cmpi eq, %arg1, %c0_i32_10 : i32
      %29 = arith.extui %28 : i1 to i32
      %c0_i32_11 = arith.constant 0 : i32
      %30 = arith.cmpi ne, %29, %c0_i32_11 : i32
      scf.if %30 {
        %c0_30 = arith.constant 0 : index
        %c0_31 = arith.constant 0 : index
        %57 = vector.load %arg16[%c0_30, %c0_31] : memref<4x32xf32, #tpu.memory_space<vmem>>, vector<4x32xf32>
        %c0_32 = arith.constant 0 : index
        %c0_33 = arith.constant 0 : index
        %58 = vector.load %arg5[%c0_32, %c0_33] : memref<4x1xf32, #tpu.memory_space<vmem>>, vector<4x1xf32>
        %59 = vector.broadcast %58 : vector<4x1xf32> to vector<4x32xf32>
        %60 = arith.mulf %57, %59 : vector<4x32xf32>
        %c0_34 = arith.constant 0 : index
        %c0_35 = arith.constant 0 : index
        %61 = vector.load %arg15[%c0_34, %c0_35] : memref<4x32xf32, #tpu.memory_space<vmem>>, vector<4x32xf32>
        tpu.vector_store %arg15[%c0_34, %c0_35], %60 {strides = array<i32>} : memref<4x32xf32, #tpu.memory_space<vmem>>, vector<4x32xf32>,
        %cst_36 = arith.constant 0.000000e+00 : f32
        %62 = vector.broadcast %cst_36 : f32 to vector<1x4xf32>
        %c0_37 = arith.constant 0 : index
        %c0_38 = arith.constant 0 : index
        %63 = vector.load %arg17[%c0_37, %c0_38] : memref<1x4xf32, #tpu.memory_space<vmem>>, vector<1x4xf32>
        tpu.vector_store %arg17[%c0_37, %c0_38], %62 {strides = array<i32>} : memref<1x4xf32, #tpu.memory_space<vmem>>, vector<1x4xf32>,
      } else {
      }
      %c0_12 = arith.constant 0 : index
      %c0_13 = arith.constant 0 : index
      %31 = vector.load %arg15[%c0_12, %c0_13] : memref<4x32xf32, #tpu.memory_space<vmem>>, vector<4x32xf32>
      %cst = arith.constant dense<0.000000e+00> : vector<8x32xf32>
      %32 = tpu.matmul %7, %31, %cst {dimension_numbers = #tpu.dot_dimension_numbers<[1], [0], [0], [1], [0, 0, 1, 1], [], []>} : vector<8x4xf32>, vector<4x32xf32>, vector<8x32xf32> -> vector<8x32xf32>
      %33 = arith.truncf %32 : vector<8x32xf32> to vector<8x32xbf16>
      %c0_14 = arith.constant 0 : index
      %c0_15 = arith.constant 0 : index
      %34 = vector.load %arg7[%c0_14, %c0_15] : memref<32x128xbf16, #tpu.memory_space<vmem>>, vector<32x128xbf16>
      %cst_16 = arith.constant dense<0.000000e+00> : vector<8x128xf32>
      %35 = tpu.matmul %33, %34, %cst_16 {dimension_numbers = #tpu.dot_dimension_numbers<[1], [0], [0], [1], [0, 0, 1, 1], [], []>} : vector<8x32xbf16>, vector<32x128xbf16>, vector<8x128xf32> -> vector<8x128xf32>
      %c0_17 = arith.constant 0 : index
      %c0_18 = arith.constant 0 : index
      %36 = vector.load %arg8[%c0_17, %c0_18] : memref<32x128xbf16, #tpu.memory_space<vmem>>, vector<32x128xbf16>
      %cst_19 = arith.constant dense<0.000000e+00> : vector<8x128xf32>
      %37 = tpu.matmul %15, %36, %cst_19 {dimension_numbers = #tpu.dot_dimension_numbers<[1], [0], [0], [1], [0, 0, 1, 1], [], []>} : vector<8x32xbf16>, vector<32x128xbf16>, vector<8x128xf32> -> vector<8x128xf32>
      %38 = arith.addf %35, %37 : vector<8x128xf32>
      %cst_20 = arith.constant 0.000000e+00 : f32
      %39 = vector.broadcast %cst_20 : f32 to vector<8x128xf32>
      %40 = arith.cmpf oge, %38, %39 : vector<8x128xf32>
      %cst_21 = arith.constant 2.000000e-01 : f32
      %41 = vector.broadcast %cst_21 : f32 to vector<8x128xf32>
      %42 = arith.mulf %41, %38 : vector<8x128xf32>
      %43 = arith.select %40, %38, %42 : vector<8x128xi1>, vector<8x128xf32>
      %cst_22 = arith.constant dense<0xFF800000> : vector<8xf32>
      %44 = vector.multi_reduction <maximumf>, %43, %cst_22 [1] : vector<8x128xf32> to vector<8xf32>
      %45 = vector.shape_cast %44 : vector<8xf32> to vector<8x1xf32>
      %cst_23 = arith.constant 5.000000e-01 : f32
      %46 = vector.broadcast %cst_23 : f32 to vector<8x4xf32>
      %47 = arith.cmpf ogt, %7, %46 : vector<8x4xf32>
      %cst_24 = arith.constant -1.000000e+30 : f32
      %48 = vector.shape_cast %45 : vector<8x1xf32> to vector<8x1xf32>
      %49 = vector.broadcast %48 : vector<8x1xf32> to vector<8x4xf32>
      %50 = vector.broadcast %cst_24 : f32 to vector<8x4xf32>
      %51 = arith.select %47, %49, %50 : vector<8x4xi1>, vector<8x4xf32>
      %c0_25 = arith.constant 0 : index
      %c0_26 = arith.constant 0 : index
      %52 = vector.load %arg17[%c0_25, %c0_26] : memref<1x4xf32, #tpu.memory_space<vmem>>, vector<1x4xf32>
      %cst_27 = arith.constant dense<0xFF800000> : vector<4xf32>
      %53 = vector.multi_reduction <maximumf>, %51, %cst_27 [0] : vector<8x4xf32> to vector<4xf32>
      %54 = vector.shape_cast %53 : vector<4xf32> to vector<1x4xf32>
      %55 = arith.maximumf %52, %54 : vector<1x4xf32>
      %c0_28 = arith.constant 0 : index
      %c0_29 = arith.constant 0 : index
      %56 = vector.load %arg17[%c0_28, %c0_29] : memref<1x4xf32, #tpu.memory_space<vmem>>, vector<1x4xf32>
      tpu.vector_store %arg17[%c0_28, %c0_29], %55 {strides = array<i32>} : memref<1x4xf32, #tpu.memory_space<vmem>>, vector<1x4xf32>,
    } else {
    }
    %c2_i32 = arith.constant 2 : i32
    %22 = arith.cmpi eq, %arg0, %c2_i32 : i32
    %23 = arith.extui %22 : i1 to i32
    %c0_i32_8 = arith.constant 0 : i32
    %24 = arith.cmpi ne, %23, %c0_i32_8 : i32
    scf.if %24 {
      %c0_i32_10 = arith.constant 0 : i32
      %28 = arith.cmpi eq, %arg1, %c0_i32_10 : i32
      %29 = arith.extui %28 : i1 to i32
      %c0_i32_11 = arith.constant 0 : i32
      %30 = arith.cmpi ne, %29, %c0_i32_11 : i32
      scf.if %30 {
        %cst_30 = arith.constant 0.000000e+00 : f32
        %57 = vector.broadcast %cst_30 : f32 to vector<4x128xf32>
        %c0_31 = arith.constant 0 : index
        %c0_32 = arith.constant 0 : index
        %58 = vector.load %arg18[%c0_31, %c0_32] : memref<4x128xf32, #tpu.memory_space<vmem>>, vector<4x128xf32>
        tpu.vector_store %arg18[%c0_31, %c0_32], %57 {strides = array<i32>} : memref<4x128xf32, #tpu.memory_space<vmem>>, vector<4x128xf32>,
      } else {
      }
      %c0_12 = arith.constant 0 : index
      %c0_13 = arith.constant 0 : index
      %31 = vector.load %arg15[%c0_12, %c0_13] : memref<4x32xf32, #tpu.memory_space<vmem>>, vector<4x32xf32>
      %cst = arith.constant dense<0.000000e+00> : vector<8x32xf32>
      %32 = tpu.matmul %7, %31, %cst {dimension_numbers = #tpu.dot_dimension_numbers<[1], [0], [0], [1], [0, 0, 1, 1], [], []>} : vector<8x4xf32>, vector<4x32xf32>, vector<8x32xf32> -> vector<8x32xf32>
      %33 = arith.truncf %32 : vector<8x32xf32> to vector<8x32xbf16>
      %c0_14 = arith.constant 0 : index
      %c0_15 = arith.constant 0 : index
      %34 = vector.load %arg7[%c0_14, %c0_15] : memref<32x128xbf16, #tpu.memory_space<vmem>>, vector<32x128xbf16>
      %cst_16 = arith.constant dense<0.000000e+00> : vector<8x128xf32>
      %35 = tpu.matmul %33, %34, %cst_16 {dimension_numbers = #tpu.dot_dimension_numbers<[1], [0], [0], [1], [0, 0, 1, 1], [], []>} : vector<8x32xbf16>, vector<32x128xbf16>, vector<8x128xf32> -> vector<8x128xf32>
      %c0_17 = arith.constant 0 : index
      %c0_18 = arith.constant 0 : index
      %36 = vector.load %arg8[%c0_17, %c0_18] : memref<32x128xbf16, #tpu.memory_space<vmem>>, vector<32x128xbf16>
      %cst_19 = arith.constant dense<0.000000e+00> : vector<8x128xf32>
      %37 = tpu.matmul %15, %36, %cst_19 {dimension_numbers = #tpu.dot_dimension_numbers<[1], [0], [0], [1], [0, 0, 1, 1], [], []>} : vector<8x32xbf16>, vector<32x128xbf16>, vector<8x128xf32> -> vector<8x128xf32>
      %38 = arith.addf %35, %37 : vector<8x128xf32>
      %cst_20 = arith.constant 0.000000e+00 : f32
      %39 = vector.broadcast %cst_20 : f32 to vector<8x128xf32>
      %40 = arith.cmpf oge, %38, %39 : vector<8x128xf32>
      %cst_21 = arith.constant 2.000000e-01 : f32
      %41 = vector.broadcast %cst_21 : f32 to vector<8x128xf32>
      %42 = arith.mulf %41, %38 : vector<8x128xf32>
      %43 = arith.select %40, %38, %42 : vector<8x128xi1>, vector<8x128xf32>
      %c0_22 = arith.constant 0 : index
      %c0_23 = arith.constant 0 : index
      %44 = vector.load %arg17[%c0_22, %c0_23] : memref<1x4xf32, #tpu.memory_space<vmem>>, vector<1x4xf32>
      %45 = vector.broadcast %44 : vector<1x4xf32> to vector<8x4xf32>
      %46 = arith.mulf %7, %45 : vector<8x4xf32>
      %cst_24 = arith.constant dense<0.000000e+00> : vector<8xf32>
      %47 = vector.multi_reduction <add>, %46, %cst_24 [1] : vector<8x4xf32> to vector<8xf32>
      %48 = vector.shape_cast %47 : vector<8xf32> to vector<8x1xf32>
      %49 = vector.broadcast %48 : vector<8x1xf32> to vector<8x128xf32>
      %50 = arith.subf %43, %49 : vector<8x128xf32>
      %51 = math.exp %50 : vector<8x128xf32>
      %c0_25 = arith.constant 0 : index
      %c0_26 = arith.constant 0 : index
      %52 = vector.load %arg18[%c0_25, %c0_26] : memref<4x128xf32, #tpu.memory_space<vmem>>, vector<4x128xf32>
      %53 = arith.truncf %51 : vector<8x128xf32> to vector<8x128xbf16>
      %cst_27 = arith.constant dense<0.000000e+00> : vector<4x128xf32>
      %54 = tpu.matmul %13, %53, %cst_27 {dimension_numbers = #tpu.dot_dimension_numbers<[1], [0], [0], [1], [0, 0, 1, 1], [], []>} : vector<4x8xbf16>, vector<8x128xbf16>, vector<4x128xf32> -> vector<4x128xf32>
      %55 = arith.addf %52, %54 : vector<4x128xf32>
      %c0_28 = arith.constant 0 : index
      %c0_29 = arith.constant 0 : index
      %56 = vector.load %arg18[%c0_28, %c0_29] : memref<4x128xf32, #tpu.memory_space<vmem>>, vector<4x128xf32>
      tpu.vector_store %arg18[%c0_28, %c0_29], %55 {strides = array<i32>} : memref<4x128xf32, #tpu.memory_space<vmem>>, vector<4x128xf32>,
    } else {
    }
    %c3_i32 = arith.constant 3 : i32
    %25 = arith.cmpi eq, %arg0, %c3_i32 : i32
    %26 = arith.extui %25 : i1 to i32
    %c0_i32_9 = arith.constant 0 : i32
    %27 = arith.cmpi ne, %26, %c0_i32_9 : i32
    scf.if %27 {
      %c0_i32_10 = arith.constant 0 : i32
      %28 = arith.cmpi eq, %arg1, %c0_i32_10 : i32
      %29 = arith.extui %28 : i1 to i32
      %c0_i32_11 = arith.constant 0 : i32
      %30 = arith.cmpi ne, %29, %c0_i32_11 : i32
      scf.if %30 {
        %cst_47 = arith.constant 0.000000e+00 : f32
        %76 = vector.broadcast %cst_47 : f32 to vector<4x32xf32>
        %c0_48 = arith.constant 0 : index
        %c0_49 = arith.constant 0 : index
        %77 = vector.load %arg16[%c0_48, %c0_49] : memref<4x32xf32, #tpu.memory_space<vmem>>, vector<4x32xf32>
        tpu.vector_store %arg16[%c0_48, %c0_49], %76 {strides = array<i32>} : memref<4x32xf32, #tpu.memory_space<vmem>>, vector<4x32xf32>,
      } else {
      }
      %c0_12 = arith.constant 0 : index
      %c0_13 = arith.constant 0 : index
      %31 = vector.load %arg15[%c0_12, %c0_13] : memref<4x32xf32, #tpu.memory_space<vmem>>, vector<4x32xf32>
      %cst = arith.constant dense<0.000000e+00> : vector<8x32xf32>
      %32 = tpu.matmul %7, %31, %cst {dimension_numbers = #tpu.dot_dimension_numbers<[1], [0], [0], [1], [0, 0, 1, 1], [], []>} : vector<8x4xf32>, vector<4x32xf32>, vector<8x32xf32> -> vector<8x32xf32>
      %33 = arith.truncf %32 : vector<8x32xf32> to vector<8x32xbf16>
      %c0_14 = arith.constant 0 : index
      %c0_15 = arith.constant 0 : index
      %34 = vector.load %arg7[%c0_14, %c0_15] : memref<32x128xbf16, #tpu.memory_space<vmem>>, vector<32x128xbf16>
      %cst_16 = arith.constant dense<0.000000e+00> : vector<8x128xf32>
      %35 = tpu.matmul %33, %34, %cst_16 {dimension_numbers = #tpu.dot_dimension_numbers<[1], [0], [0], [1], [0, 0, 1, 1], [], []>} : vector<8x32xbf16>, vector<32x128xbf16>, vector<8x128xf32> -> vector<8x128xf32>
      %c0_17 = arith.constant 0 : index
      %c0_18 = arith.constant 0 : index
      %36 = vector.load %arg8[%c0_17, %c0_18] : memref<32x128xbf16, #tpu.memory_space<vmem>>, vector<32x128xbf16>
      %cst_19 = arith.constant dense<0.000000e+00> : vector<8x128xf32>
      %37 = tpu.matmul %15, %36, %cst_19 {dimension_numbers = #tpu.dot_dimension_numbers<[1], [0], [0], [1], [0, 0, 1, 1], [], []>} : vector<8x32xbf16>, vector<32x128xbf16>, vector<8x128xf32> -> vector<8x128xf32>
      %38 = arith.addf %35, %37 : vector<8x128xf32>
      %cst_20 = arith.constant 0.000000e+00 : f32
      %39 = vector.broadcast %cst_20 : f32 to vector<8x128xf32>
      %40 = arith.cmpf oge, %38, %39 : vector<8x128xf32>
      %cst_21 = arith.constant 2.000000e-01 : f32
      %41 = vector.broadcast %cst_21 : f32 to vector<8x128xf32>
      %42 = arith.mulf %41, %38 : vector<8x128xf32>
      %43 = arith.select %40, %38, %42 : vector<8x128xi1>, vector<8x128xf32>
      %c0_22 = arith.constant 0 : index
      %c0_23 = arith.constant 0 : index
      %44 = vector.load %arg17[%c0_22, %c0_23] : memref<1x4xf32, #tpu.memory_space<vmem>>, vector<1x4xf32>
      %45 = vector.broadcast %44 : vector<1x4xf32> to vector<8x4xf32>
      %46 = arith.mulf %7, %45 : vector<8x4xf32>
      %cst_24 = arith.constant dense<0.000000e+00> : vector<8xf32>
      %47 = vector.multi_reduction <add>, %46, %cst_24 [1] : vector<8x4xf32> to vector<8xf32>
      %48 = vector.shape_cast %47 : vector<8xf32> to vector<8x1xf32>
      %49 = vector.broadcast %48 : vector<8x1xf32> to vector<8x128xf32>
      %50 = arith.subf %43, %49 : vector<8x128xf32>
      %51 = math.exp %50 : vector<8x128xf32>
      %c0_25 = arith.constant 0 : index
      %c0_26 = arith.constant 0 : index
      %52 = vector.load %arg18[%c0_25, %c0_26] : memref<4x128xf32, #tpu.memory_space<vmem>>, vector<4x128xf32>
      %cst_27 = arith.constant dense<0.000000e+00> : vector<8x128xf32>
      %53 = tpu.matmul %7, %52, %cst_27 {dimension_numbers = #tpu.dot_dimension_numbers<[1], [0], [0], [1], [0, 0, 1, 1], [], []>} : vector<8x4xf32>, vector<4x128xf32>, vector<8x128xf32> -> vector<8x128xf32>
      %cst_28 = arith.constant 1.000000e-16 : f32
      %54 = vector.broadcast %cst_28 : f32 to vector<8x128xf32>
      %55 = arith.addf %53, %54 : vector<8x128xf32>
      %56 = tpu.reciprocal %55 {approx = true} : vector<8x128xf32> -> vector<8x128xf32>
      %57 = arith.mulf %51, %56 : vector<8x128xf32>
      %c0_29 = arith.constant 0 : index
      %c0_30 = arith.constant 0 : index
      %58 = vector.load %arg14[%c0_29, %c0_30] : memref<8x128xf32, #tpu.memory_space<vmem>>, vector<8x128xf32>
      tpu.vector_store %arg14[%c0_29, %c0_30], %57 {strides = array<i32>} : memref<8x128xf32, #tpu.memory_space<vmem>>, vector<8x128xf32>,
      %c0_31 = arith.constant 0 : index
      %c0_32 = arith.constant 0 : index
      %59 = vector.load %arg6[%c0_31, %c0_32] : memref<32x128xbf16, #tpu.memory_space<vmem>>, vector<32x128xbf16>
      %cst_33 = arith.constant dense<0.000000e+00> : vector<8x128xf32>
      %60 = tpu.matmul %15, %59, %cst_33 {dimension_numbers = #tpu.dot_dimension_numbers<[1], [0], [0], [1], [0, 0, 1, 1], [], []>} : vector<8x32xbf16>, vector<32x128xbf16>, vector<8x128xf32> -> vector<8x128xf32>
      %61 = arith.truncf %57 : vector<8x128xf32> to vector<8x128xbf16>
      %c0_34 = arith.constant 0 : index
      %c0_35 = arith.constant 0 : index
      %62 = vector.load %arg9[%c0_34, %c0_35] : memref<128x128xbf16, #tpu.memory_space<vmem>>, vector<128x128xbf16>
      %cst_36 = arith.constant dense<0.000000e+00> : vector<8x128xf32>
      %63 = tpu.matmul %61, %62, %cst_36 {dimension_numbers = #tpu.dot_dimension_numbers<[1], [0], [0], [1], [0, 0, 1, 1], [], []>} : vector<8x128xbf16>, vector<128x128xbf16>, vector<8x128xf32> -> vector<8x128xf32>
      %64 = arith.mulf %60, %63 : vector<8x128xf32>
      %65 = arith.truncf %64 : vector<8x128xf32> to vector<8x128xbf16>
      %c0_37 = arith.constant 0 : index
      %c0_38 = arith.constant 0 : index
      %66 = vector.load %arg10[%c0_37, %c0_38] : memref<128x32xbf16, #tpu.memory_space<vmem>>, vector<128x32xbf16>
      %cst_39 = arith.constant dense<0.000000e+00> : vector<8x32xf32>
      %67 = tpu.matmul %65, %66, %cst_39 {dimension_numbers = #tpu.dot_dimension_numbers<[1], [0], [0], [1], [0, 0, 1, 1], [], []>} : vector<8x128xbf16>, vector<128x32xbf16>, vector<8x32xf32> -> vector<8x32xf32>
      %c0_40 = arith.constant 0 : index
      %c0_41 = arith.constant 0 : index
      %68 = vector.load %arg16[%c0_40, %c0_41] : memref<4x32xf32, #tpu.memory_space<vmem>>, vector<4x32xf32>
      %69 = arith.truncf %67 : vector<8x32xf32> to vector<8x32xbf16>
      %cst_42 = arith.constant dense<0.000000e+00> : vector<4x32xf32>
      %70 = tpu.matmul %13, %69, %cst_42 {dimension_numbers = #tpu.dot_dimension_numbers<[1], [0], [0], [1], [0, 0, 1, 1], [], []>} : vector<4x8xbf16>, vector<8x32xbf16>, vector<4x32xf32> -> vector<4x32xf32>
      %71 = arith.addf %68, %70 : vector<4x32xf32>
      %c0_43 = arith.constant 0 : index
      %c0_44 = arith.constant 0 : index
      %72 = vector.load %arg16[%c0_43, %c0_44] : memref<4x32xf32, #tpu.memory_space<vmem>>, vector<4x32xf32>
      tpu.vector_store %arg16[%c0_43, %c0_44], %71 {strides = array<i32>} : memref<4x32xf32, #tpu.memory_space<vmem>>, vector<4x32xf32>,
      %c1_i32_45 = arith.constant 1 : i32
      %73 = arith.cmpi eq, %arg1, %c1_i32_45 : i32
      %74 = arith.extui %73 : i1 to i32
      %c0_i32_46 = arith.constant 0 : i32
      %75 = arith.cmpi ne, %74, %c0_i32_46 : i32
      scf.if %75 {
        %c0_47 = arith.constant 0 : index
        %c0_48 = arith.constant 0 : index
        %76 = vector.load %arg16[%c0_47, %c0_48] : memref<4x32xf32, #tpu.memory_space<vmem>>, vector<4x32xf32>
        %77 = arith.truncf %76 : vector<4x32xf32> to vector<4x32xbf16>
        %c0_49 = arith.constant 0 : index
        %c0_50 = arith.constant 0 : index
        %78 = vector.load %arg11[%c0_49, %c0_50] : memref<32x32xbf16, #tpu.memory_space<vmem>>, vector<32x32xbf16>
        %cst_51 = arith.constant dense<0.000000e+00> : vector<4x32xf32>
        %79 = tpu.matmul %77, %78, %cst_51 {dimension_numbers = #tpu.dot_dimension_numbers<[1], [0], [0], [1], [0, 0, 1, 1], [], []>} : vector<4x32xbf16>, vector<32x32xbf16>, vector<4x32xf32> -> vector<4x32xf32>
        %c0_52 = arith.constant 0 : index
        %c0_53 = arith.constant 0 : index
        %80 = vector.load %arg12[%c0_52, %c0_53] : memref<1x32xf32, #tpu.memory_space<vmem>>, vector<1x32xf32>
        %81 = vector.broadcast %80 : vector<1x32xf32> to vector<4x32xf32>
        %82 = arith.addf %79, %81 : vector<4x32xf32>
        %c0_54 = arith.constant 0 : index
        %c0_55 = arith.constant 0 : index
        %83 = vector.load %arg13[%c0_54, %c0_55] : memref<4x32xf32, #tpu.memory_space<vmem>>, vector<4x32xf32>
        tpu.vector_store %arg13[%c0_54, %c0_55], %82 {strides = array<i32>} : memref<4x32xf32, #tpu.memory_space<vmem>>, vector<4x32xf32>,
      } else {
      }
    } else {
    }
    return
  }
  func.func @transform_0(%arg0: i32, %arg1: i32) -> (i32, i32) {
    %c0_i32 = arith.constant 0 : i32
    %c0_i32_0 = arith.constant 0 : i32
    return %arg1, %c0_i32 : i32, i32
  }
  func.func @transform_1(%arg0: i32, %arg1: i32) -> (i32, i32, i32) {
    %c0_i32 = arith.constant 0 : i32
    %c0_i32_0 = arith.constant 0 : i32
    %c0_i32_1 = arith.constant 0 : i32
    return %arg1, %c0_i32, %c0_i32_0 : i32, i32, i32
  }
  func.func @transform_2(%arg0: i32, %arg1: i32) -> (i32, i32) {
    %c0_i32 = arith.constant 0 : i32
    %c0_i32_0 = arith.constant 0 : i32
    return %arg1, %c0_i32 : i32, i32
  }
  func.func @transform_3(%arg0: i32, %arg1: i32) -> (i32, i32) {
    %c0_i32 = arith.constant 0 : i32
    %c0_i32_0 = arith.constant 0 : i32
    %c0_i32_1 = arith.constant 0 : i32
    return %c0_i32, %c0_i32_0 : i32, i32
  }
  func.func @transform_4(%arg0: i32, %arg1: i32) -> (i32, i32) {
    %c0_i32 = arith.constant 0 : i32
    %c0_i32_0 = arith.constant 0 : i32
    %c0_i32_1 = arith.constant 0 : i32
    return %c0_i32, %c0_i32_0 : i32, i32
  }
  func.func @transform_5(%arg0: i32, %arg1: i32) -> (i32, i32) {
    %c0_i32 = arith.constant 0 : i32
    %c0_i32_0 = arith.constant 0 : i32
    %c0_i32_1 = arith.constant 0 : i32
    return %c0_i32, %c0_i32_0 : i32, i32
  }
  func.func @transform_6(%arg0: i32, %arg1: i32) -> (i32, i32) {
    %c0_i32 = arith.constant 0 : i32
    %c0_i32_0 = arith.constant 0 : i32
    %c0_i32_1 = arith.constant 0 : i32
    return %c0_i32, %c0_i32_0 : i32, i32
  }
  func.func @transform_7(%arg0: i32, %arg1: i32) -> (i32, i32) {
    %c0_i32 = arith.constant 0 : i32
    %c0_i32_0 = arith.constant 0 : i32
    %c0_i32_1 = arith.constant 0 : i32
    return %c0_i32, %c0_i32_0 : i32, i32
  }
  func.func @transform_8(%arg0: i32, %arg1: i32) -> (i32, i32) {
    %c0_i32 = arith.constant 0 : i32
    %c0_i32_0 = arith.constant 0 : i32
    %c0_i32_1 = arith.constant 0 : i32
    return %c0_i32, %c0_i32_0 : i32, i32
  }
  func.func @transform_9(%arg0: i32, %arg1: i32) -> (i32, i32) {
    %c0_i32 = arith.constant 0 : i32
    %c0_i32_0 = arith.constant 0 : i32
    %c0_i32_1 = arith.constant 0 : i32
    return %c0_i32, %c0_i32_0 : i32, i32
  }
  func.func @transform_10(%arg0: i32, %arg1: i32) -> (i32, i32) {
    %c0_i32 = arith.constant 0 : i32
    %c0_i32_0 = arith.constant 0 : i32
    %c0_i32_1 = arith.constant 0 : i32
    return %c0_i32, %c0_i32_0 : i32, i32
  }
  func.func @transform_11(%arg0: i32, %arg1: i32) -> (i32, i32) {
    %c0_i32 = arith.constant 0 : i32
    %c0_i32_0 = arith.constant 0 : i32
    %c0_i32_1 = arith.constant 0 : i32
    return %c0_i32, %c0_i32_0 : i32, i32
  }
  func.func @transform_12(%arg0: i32, %arg1: i32) -> (i32, i32) {
    %c0_i32 = arith.constant 0 : i32
    %c0_i32_0 = arith.constant 0 : i32
    return %arg1, %c0_i32 : i32, i32
  }
}

</mosaic_0001>

<bundles_post_ra>
// kernel: tpu_custom_call.1
= control target key start
LH: loop header
LB: loop body
LE: loop exit
PB: predicated region body
PF: predicated region fallthrough
CT: control target
= control target key end

     0   :  { %s3055_s0 = inlined_call_operand.vmem [shape: s32[16,1], index: 0, kind: input, shape index: {}]   ;;  %s3056_s1 = inlined_call_operand.vmem [shape: s32[2,1,8], index: 1, kind: input, shape index: {}]   ;;  %s3057_s2 = inlined_call_operand.vmem [shape: f32[16,32], index: 2, kind: input, shape index: {}]   ;;  %s3058_s3 = inlined_call_operand.vmem [shape: f32[4,1], index: 3, kind: input, shape index: {}]   ;;  %s3059_s4 = inlined_call_operand.vmem [shape: bf16[32,128], index: 4, kind: input, shape index: {}]   ;;  %s3060_s5 = inlined_call_operand.hbm [shape: bf16[32,128], index: 5, kind: input, shape index: {}]   ;;  %s3061_s6 = inlined_call_operand.hbm [shape: bf16[32,128], index: 6, kind: input, shape index: {}]   ;;  %s3062_s7 = inlined_call_operand.vmem [shape: bf16[128,128], index: 7, kind: input, shape index: {}]   ;;  %s3063_s8 = inlined_call_operand.vmem [shape: bf16[128,32], index: 8, kind: input, shape index: {}]   ;;  %s3064_s9 = inlined_call_operand.hbm [shape: bf16[32,32], index: 9, kind: input, shape index: {}]   ;;  %s3065_s10 = inlined_call_operand.vmem [shape: f32[1,32], index: 10, kind: input, shape index: {}]   ;;  %s3066_s11 = inlined_call_operand.hbm [shape: f32[4,32], index: 11, kind: output, shape index: {0}]   ;;  %s3067_s12 = inlined_call_operand.hbm [shape: f32[16,128], index: 12, kind: output, shape index: {1}]  }
   0x1   :  { %3075 = sst [smem:[#allocation27_spill]] %s3060_s5 }
   0x2   :  { %18 = vsyncpa [#allocation7], 0 }
   0x3   :  { %19 = vsyncpa [#allocation10], 0 }
   0x4   :  { %20 = vsyncpa [#allocation8], 0 }
   0x5   :  { %21 = vsyncpa [#allocation14], 0 }
   0x6   :  { %23 = vsyncpa [#allocation14 + $0x1], 0  ;;  %s2697_s21 = smov 0   ;;  %s2699_s22 = smov 0  }
   0x7   :  { %s2701_s23 = smov 0   ;;  %s2703_s24 = smov 0  }
   0x8   :  { %s2705_s25 = smov 0   ;;  %s2707_s26 = smov 0  }
   0x9   :  { %s2709_s27 = smov 0   ;;  %s2711_s28 = smov 0  }
   0xa LB: > { %3076 = sst [smem:[#allocation19_spill]] %s2578_s21  ;;  %s1948_s29 = sadd.s32 4294967295, %s2606_s28   ;;  %s2606_s28 = sphi %s2711_s28, %s29_s28   ;;  %s2602_s27 = sphi %s2709_s27, %s3100_s27   ;;  %s2598_s26 = sphi %s2707_s26, %s3099_s26   ;;  %s2594_s25 = sphi %s2705_s25, %s3098_s25   ;;  %s2590_s24 = sphi %s2703_s24, %s3097_s24   ;;  %s2586_s23 = sphi %s2701_s23, %s3096_s23   ;;  %s2582_s22 = sphi %s2699_s22, %s3102_s22   ;;  %s2578_s21 = sphi %s2697_s21, %s3101_s21  }
   0xb   : > { %3077 = sst [smem:[#allocation20_spill]] %s2586_s23  ;;  %s1949_s30 = sadd.s32 4294967294, %s2606_s28  }
   0xc   : > { %3078 = sst [smem:[#allocation21_spill]] %s2598_s26  ;;  %s38_s13 = sadd.s32 1, %s2598_s26 }
   0xd   : > { %3079 = sst [smem:[#allocation22_spill]] %s2602_s27  ;;  %s41_s14 = sadd.s32 1, %s2602_s27 }
   0xe   : > { %p39_p0 = scmp.ge.s32.totalorder %s38_s13, 2  ;;  %s315_s15 = sadd.s32 1, %s2586_s23 }
   0xf   : > { %p325_p1 = scmp.ne.s32.totalorder %s2586_s23, %s2582_s22  ;;  %p2744_p2 = scmp.eq.s32.totalorder %s1948_s29, 7 }
  0x10   : > { %s3104_s13 = smov (%p39_p0, %s38_s13), 0  ;;  %s3106_s14 = smov (!%p39_p0, %s41_s14), %s2602_s27 }
  0x11   : > { %3081 = sst [smem:[#allocation23_spill]] %s3104_s13  ;;  %s312_s17 = ssub.s32 %s2598_s26, %s3104_s13 }
  0x12   : > { %p2755_p3 = por %p2744_p2, %p325_p1  ;;  %p43_p4 = scmp.ge.s32.totalorder %s3106_s14, 4 }
  0x13   : > { %p313_p5 = scmp.eq.s32.totalorder %s312_s17, 0  ;;  %p331_p6 = scmp.ne.s32.totalorder %s2582_s22, %s2578_s21 }
  0x14   : > { %s3082_s18 = scalar_select %p2755_p3, 1, 0 }
  0x15   : > { %p332_p7 = scmp.eq.s32.totalorder %s1949_s30, 7  ;;  %s3108_s14 = smov (%p43_p4, %s3106_s14), 0 }
  0x16   : > { %3083 = sst [smem:[#allocation24_spill]] %s3108_s14  ;;  %p1950_p9 = scmp.ge.s32.totalorder %s2606_s28, 1 }
  0x17   : > { %s2764_s19 = scalar_select %p313_p5, %s2586_s23, %s315_s15  }
  0x18   : > { %p2766_p8 = por %p332_p7, %p331_p6  ;;  %p339_p10 = scmp.lt.s32.totalorder %s2606_s28, 9 }
  0x19   : > { %3084 = sst [smem:[#allocation25_spill]] %s2764_s19  ;;  %p2772_p11 = scmp.eq.s32.totalorder %s1948_s29, 0 }
  0x1a   : > { %s3085_s20 = scalar_select %p2766_p8, 1, 0 }
  0x1b   : > { %p2776_p12 = pnand %p1950_p9, %p339_p10  ;;  %s2608_s30 = smov [#allocation9]  }
  0x1c   : > { %3086 = sst [smem:[#allocation26_spill]] %s3085_s20  ;;  %s370_s15 = sshll.u32 %s2608_s30, 4  ;;  %s371_s15 = int_to_ptr.vmem [resolvable:$true] %s370_s15 }
  0x1d   : > { %p2250_p13 = pneg %p2776_p12  ;;  %s2609_s29 = smov [#allocation6]  }
  0x1e   : > { %s357_s14 = sshll.u32 %s2609_s29, 4  ;;  %s2411_s26 = scalar_lea.vmem %s371_s15, 256  ;;  %s358_s14 = int_to_ptr.vmem [resolvable:$true] %s357_s14 }
  0x1f   : > { %p2784_p0 = pnand %p2772_p11, %p2250_p13  ;;  %p2412_p4 = scmp.ne.s32.totalorder %s371_s15, %s2411_s26 }
  0x20   : > { %p2419_p7 = scmp.lt.s32.totalorder %s371_s15, %s371_s15  ;;  %p2420_p9 = scmp.lt.s32.totalorder %s2411_s26, %s2411_s26 }
  0x21   : > { %p2402_p1 = pneg %p2784_p0 }
  0x22   : > { %p2421_p10 = por %p2420_p9, %p2419_p7 }
  0x23   : > { %p2414_p5 = pnand %p2412_p4, %p2402_p1 }
  0x25   : > { %p2415_p6 = pneg %p2414_p5 }
  0x27   : > { %p2422_p8 = pnand %p2421_p10, %p2415_p6 }
  0x29   : > { %2425 = shalt.err (!%p2422_p8)
}
  0x2a   : > { %s2610_s30 = smov 64   ;;  %s2611_s19 = smov 4  }
  0x2b   : > { %2256 = dma.hbm_to_vmem [thread:$0]  (!%p2784_p0), %s3061_s6, 256, %s371_s15, [#allocation10], %s2610_s30, %s2610_s30, %s2611_s19  }
  0x2c   : > { %s2437_s20 = scalar_lea.vmem %s358_s14, 256  ;;  %p2445_p3 = scmp.lt.s32.totalorder %s358_s14, %s358_s14 }
  0x2d   : > { %p2438_p13 = scmp.ne.s32.totalorder %s358_s14, %s2437_s20  ;;  %p2446_p7 = scmp.lt.s32.totalorder %s2437_s20, %s2437_s20 }
  0x2f   : > { %p2440_p4 = pnand %p2438_p13, %p2402_p1  ;;  %p2447_p6 = por %p2446_p7, %p2445_p3 }
  0x31   : > { %p2441_p5 = pneg %p2440_p4 }
  0x33   : > { %p2448_p8 = pnand %p2447_p6, %p2441_p5 }
  0x35   : > { %2451 = shalt.err (!%p2448_p8)
}
  0x36   : > { %s3090_s5 = sld [smem:[#allocation27_spill]]  ;;  %s2612_s23 = smov [#allocation11]  }
  0x37   : > { %s389_s15 = sshll.u32 %s2612_s23, 4  ;;  %s390_s15 = int_to_ptr.vmem [resolvable:$true] %s389_s15 }
  0x38   : > { %s2463_s29 = scalar_lea.vmem %s390_s15, 256  ;;  %p2471_p4 = scmp.lt.s32.totalorder %s390_s15, %s390_s15 }
  0x39   : > { %p2464_p9 = scmp.ne.s32.totalorder %s390_s15, %s2463_s29  ;;  %p2472_p3 = scmp.lt.s32.totalorder %s2463_s29, %s2463_s29 }
  0x3b   : > { %p2466_p10 = pnand %p2464_p9, %p2402_p1  ;;  %p2473_p5 = por %p2472_p3, %p2471_p4 }
  0x3c   : > { %2253 = dma.hbm_to_vmem [thread:$0]  (!%p2784_p0), %s3090_s5, 256, %s358_s14, [#allocation7], %s2610_s30, %s2610_s30, %s2611_s19  }
  0x3d   : > { %p2467_p13 = pneg %p2466_p10 }
  0x3f   : > { %p2474_p7 = pnand %p2473_p5, %p2467_p13 }
  0x41   : > { %2477 = shalt.err (!%p2474_p7)
}
  0x42   : > { %2259 = dma.hbm_to_vmem [thread:$0]  (!%p2784_p0), %s3064_s9, 256, %s390_s15, [#allocation10], %s2610_s30, %s2610_s30, %s2611_s19  }
  0x43   : > { %428 = sbr.rel (%p2776_p12) target bundleno = 3023 (0xbcf), region = 64 }
  0x48   : > { %2561 = dma.done.wait (%p2772_p11), [#allocation7], 256  }
  0x49   : > { %2563 = vsyncadd (%p2772_p11), [#allocation7], 4294967040 }
  0x4a   : > { %2565 = dma.done.wait (%p2772_p11), [#allocation10], 512  }
  0x4b   : > { %2567 = vsyncadd (%p2772_p11), [#allocation10], 4294966784  ;;  %p484_p0 = scmp.lt.s32.totalorder %s2590_s24, 1  ;;  %v498_v0 = vlaneseq  ;;  %v2613_v1 = vmov 0   ;;  %s481_s14 = sand.u32 1, %s2582_s22   ;;  %v2614_v7 = vmov 0.0  }
  0x4c   : > { %2360 = vset.pattern.permute.xlu0 %v2613_v1  ;;  %s2838_s5 = sshll.u32 %s481_s14, 3  ;;  %p1965_p11 = scmp.ne.s32.totalorder %s2594_s25, 0 }
  0x4d   : > { %s485_s27 = scalar_select %p484_p0, %s2590_s24, 1  ;;  %v507_v2 = vshrl.u32 %v498_v0, 7  ;;  %v499_v10 = vand.u32 127, %v498_v0 }
  0x4e   : > { %p1966_p12 = scmp.ne.s32.totalorder (!%p1965_p11), %s2590_s24, 0 }
  0x4f   : > { %s1960_s19 = sshll.u32 %s485_s27, 3  ;;  %s490_s26 = scalar_lea.vmem %s3056_s1, %s485_s27 }
  0x50   : > { %s487_s13 = scalar_lea.vmem %s3055_s0, %s1960_s19  ;;  %s494_s21 = scalar_lea.vmem %s3057_s2, %s1960_s19  ;;  %v1963_v5 = vld [vmem:[%s490_s26] ss:$0 sm:$0xff] }
  0x51   : > { %v496_v3 = vld [vmem:[%s487_s13] sm:$0xff]  ;;  %vm512_vm0 = vcmp.eq.s32.totalorder %v507_v2, %v1963_v5  ;;  %s483_s27 = scalar_lea.vmem [#allocation13], %s2838_s5 }
  0x52   : > { %v516_v4 = vld [vmem:[%s494_s21] sm:$0xff]  ;;  %501 = vperm.xlu0 %2360, %v496_v3   ;;  %v1964_v8 = vsel %vm512_vm0, 1.0, %v2614_v7 }
  0x53   : > { %v2840_v6 = vpack.c.bf16 %v516_v4, %v516_v4  ;;  %v2842_v9 = vpack.c.bf16 %v1964_v8, %v1964_v8 }
  0xcb   : > { %521 = sbr.rel (%p1965_p11) target bundleno = 419 (0x1a3), region = 80 }
  0xcd   : > { %v502_v11 = vpop.permute.xlu0 %501 }
  0xce   : > { %vm503_vm1 = vcmp.eq.s32.totalorder %v499_v10, %v502_v11 }
  0xcf   : > { %v2844_v12 = vsel %vm503_vm1, 1.0, %v2614_v7 }
  0xd0   : > { %525 = sbr.rel (%p1966_p12) target bundleno = 215 (0xd7), region = 84 }
  0xd5   : > { %vm526_vm2 = vcmask 257024   ;;  %v2615_v13 = vmov 0.0  }
  0xd6   : > { %527 = vst.msk [vmem:[#allocation3] sm:$0xf] %vm526_vm2, %v2615_v13 }
  0xd7 PF: > { %vm533_vm3 = vcmask 1043456   ;;  %v2616_v14 = vmov 0.0   ;;  %vm2617_vm4 = vmmov 0   ;;  %vm529_vm5 = vcmask 64512  }
  0xd8   : > { %2090 = vmatprep.subr.bf16.mxu0 %v2616_v14  ;;  %v535_v15 = vsel %vm533_vm3, %v2840_v6, 0  ;;  %2092 = vmatprep.mubr.msk.bf16.mxu0 %vm2617_vm4, %v2616_v14  ;;  %vm578_vm6 = vcmask 257024  }
  0xd9   : > { %2091 = vmatpush3.bf16.msra.mxu0 %v535_v15 }
  0xdc   : > { %2093 = vmatmul.mubr.msk.bf16.vlgmr.msra.gmra.mxu0 %vm529_vm5, %v2842_v9 }
  0xdd   : > { %v528_v16 = vld [vmem:[#allocation3] sm:$0xf] }
 0x19c   : > { %v571_v17 = vpop.f32.mrf.mxu0 }
 0x19d   : > { %v577_v18 = vadd.f32 %v571_v17, %v528_v16 }
 0x19e   : > { %v2094_v19 = vpop.f32.mrf.mxu0 }
 0x19f   : > { %579 = vst.msk [vmem:[#allocation3] sm:$0xf] %vm578_vm6, %v577_v18 }
 0x1a0   : > { %v574_v20 = vpop.f32.mrf.mxu0 }
 0x1a2   : > { %v2095_v21 = vpop.f32.mrf.mxu0 }
 0x1a3 PF: > { %p1968_p1 = scmp.ne.s32.totalorder %s2594_s25, 1 }
 0x1a4   : > { %p1969_p6 = scmp.ne.s32.totalorder (!%p1968_p1), %s2590_s24, 0 }
 0x1a5   : > { %583 = sbr.rel (%p1968_p1) target bundleno = 1116 (0x45c), region = 88 }
 0x1aa   : > { %587 = sbr.rel (%p1969_p6) target bundleno = 560 (0x230), region = 92 }
 0x1af   : > { %v589_v22 = vld [vmem:[%s3058_s3] sm:$0xf]  ;;  %v2618_v23 = vmov 0   ;;  %vm598_vm7 = vcmask 24576   ;;  %v2619_v24 = vmov 0.0   ;;  %vm596_vm8 = vcmask 257024  }
 0x1b0   : > { %2361 = vset.pattern.permute.xlu0 %v2618_v23  ;;  %599 = vst.msk [vmem:[#allocation4] sm:$0x1] %vm598_vm7, %v2619_v24  ;;  %v588_v25 = vld [vmem:[#allocation3] sm:$0xf] }
 0x1b1   : > { %592 = vperm.xlu0 %2361, %v589_v22  }
 0x22c   : > { %v593_v26 = vpop.permute.xlu0 %592 }
 0x22d   : > { %v595_v27 = vmul.f32 %v593_v26, %v588_v25 }
 0x22f   : > { %597 = vst.msk [vmem:[#allocation2] sm:$0xf] %vm596_vm8, %v595_v27 }
 0x230 PF: > { %vm605_vm9 = vcmask 1043456   ;;  %vm601_vm10 = vcmask 31744   ;;  %v2620_v29 = vmov 0.0   ;;  %vm2621_vm11 = vmmov 0   ;;  %v2362_v30 = vld [vmem:[#allocation9 + $0x8] sm:$0xff]   ;;  %v2363_v31 = vld [vmem:[#allocation9] sm:$0xff]  }
 0x231   : > { %2096 = vmatprep.subr.mxu0 %v2620_v29  ;;  %2098 = vmatprep.mubr.msk.f32.mxu0 %vm2621_vm11, %v2620_v29  ;;  %v2364_v32 = vld [vmem:[#allocation6 + $0x8] sm:$0xff]   ;;  %vm700_vm12 = vcmask 261120   ;;  %v2365_v33 = vld [vmem:[#allocation6] sm:$0xff]   ;;  %vm804_vm14 = vcmp.gt.f32.partialorder %v2844_v12, 0.5  ;;  %v806_v56 = vld [vmem:[#allocation4] sm:$0x1] }
 0x232   : > { %2101 = vmatprep.subr.bf16.mxu1 %v2620_v29  ;;  %2105 = vmatprep.mubr.msk.bf16.mxu1 %vm2621_vm11, %v2620_v29  ;;  %vm815_vm15 = vcmask 24576  }
 0x233   : > { %2102 = vmatpush3.bf16.msra.mxu1 %v2362_v30 }
 0x234   : > { %2103 = vmatprep.subr.bf16.mxu1 %v2620_v29 }
 0x236   : > { %v600_v28 = vld [vmem:[#allocation2] sm:$0xf] }
 0x237   : > { %2097 = vmatpush3.msk.msra.mxu0 %vm605_vm9, %v600_v28  ;;  %2104 = vmatpush3.bf16.msra.mxu1 %v2363_v31 }
 0x238   : > { %2099 = vmatmul.mubr.msk.f32.vlgmr.msra.gmra.mxu0 %vm601_vm10, %v2844_v12  ;;  %2109 = vmatprep.subr.bf16.mxu0 %v2620_v29 }
 0x239   : > { %2110 = vmatpush3.bf16.msra.mxu0 %v2364_v32  ;;  %2113 = vmatprep.mubr.msk.bf16.mxu0 %vm2621_vm11, %v2620_v29 }
 0x23a   : > { %2111 = vmatprep.subr.bf16.mxu0 %v2620_v29  ;;  %2106 = vmatmul.mubr.msk.bf16.vlgmr.msra.gmra.mxu1 %vm700_vm12, %v2840_v6 }
 0x23d   : > { %2112 = vmatpush3.bf16.msra.mxu0 %v2365_v33 }
 0x2f8   : > { %v675_v34 = vpop.f32.mrf.mxu0 }
 0x2f9   : > { %v679_v35 = vpack.c.bf16 %v675_v34, %v675_v34 }
 0x2fa   : > { %v2100_v36 = vpop.f32.mrf.mxu0  ;;  %v738_v37 = vpop.f32.mrf.mxu1 }
 0x2fb   : > { %2114 = vmatmul.mubr.msk.bf16.vlgmr.msra.gmra.mxu0 %vm700_vm12, %v679_v35 }
 0x2fc   : > { %v2107_v38 = vpop.f32.mrf.mxu1 }
 0x2fe   : > { %v741_v39 = vpop.f32.mrf.mxu1 }
 0x300   : > { %v2108_v40 = vpop.f32.mrf.mxu1 }
 0x3bb   : > { %v793_v41 = vpop.f32.mrf.mxu0 }
 0x3bc   : > { %v794_v42 = vadd.f32 %v793_v41, %v738_v37 }
 0x3bd   : > { %v2115_v43 = vpop.f32.mrf.mxu0 }
 0x3be   : > { %vm799_vm13 = vcmp.ge.f32.partialorder %v794_v42, 0.0  ;;  %v800_v44 = vmul.f32 0.2, %v794_v42 }
 0x3bf   : > { %v796_v45 = vpop.f32.mrf.mxu0 }
 0x3c0   : > { %v801_v46 = vsel %vm799_vm13, %v794_v42, %v800_v44 }
 0x3c1   : > { %v2116_v47 = vpop.f32.mrf.mxu0  ;;  %802 = vmax.xlane.f32.xlu0 %v801_v46 }
 0x44a   : > { %v803_v48 = vpop.xlane.xlu0 %802 }
 0x44b   : > { %v805_v49 = vsel %vm804_vm14, %v803_v48, -1e+30 }
 0x44c   : > { %v807_v50 = vsel %vm601_vm10, %v805_v49, -inf }
 0x44d   : > { %v808_v51 = vrot.slane %v807_v50, 4 }
 0x44f   : > { %v809_v52 = vmax.f32 %v807_v50, %v808_v51 }
 0x451   : > { %v810_v53 = vrot.slane %v809_v52, 2 }
 0x453   : > { %v811_v54 = vmax.f32 %v809_v52, %v810_v53 }
 0x455   : > { %v812_v55 = vrot.slane %v811_v54, 1 }
 0x457   : > { %v813_v57 = vmax.f32 %v811_v54, %v812_v55 }
 0x459   : > { %v814_v58 = vmax.f32 %v806_v56, %v813_v57 }
 0x45b   : > { %816 = vst.msk [vmem:[#allocation4] sm:$0x1] %vm815_vm15, %v814_v58 }
 0x45c PF: > { %p1978_p8 = scmp.ne.s32.totalorder %s2594_s25, 2 }
 0x45d   : > { %p1979_p9 = scmp.ne.s32.totalorder (!%p1978_p8), %s2590_s24, 0 }
 0x45e   : > { %820 = sbr.rel (%p1978_p8) target bundleno = 1749 (0x6d5), region = 96 }
 0x463   : > { %824 = sbr.rel (%p1979_p9) target bundleno = 1130 (0x46a), region = 100 }
 0x468   : > { %v2622_v59 = vmov 0.0  }
 0x469   : > { %825 = vst [vmem:[#allocation5] sm:$0xf] %v2622_v59 }
 0x46a PF: > { %v826_v60 = vld [vmem:[#allocation2] sm:$0xf]  ;;  %vm831_vm0 = vcmask 1043456   ;;  %vm827_vm1 = vcmask 31744   ;;  %v2623_v61 = vmov 0.0   ;;  %vm2624_vm2 = vmmov 0  }
 0x46b   : > { %2117 = vmatprep.subr.mxu0 %v2623_v61  ;;  %2119 = vmatprep.mubr.msk.f32.mxu0 %vm2624_vm2, %v2623_v61  ;;  %v2366_v62 = vld [vmem:[#allocation9 + $0x8] sm:$0xff]   ;;  %v2367_v63 = vld [vmem:[#allocation9] sm:$0xff]   ;;  %v2368_v0 = vld [vmem:[#allocation6 + $0x8] sm:$0xff]   ;;  %vm926_vm3 = vcmask 261120   ;;  %vm1044_vm5 = vcmask 64512  }
 0x46c   : > { %2118 = vmatpush3.msk.msra.mxu0 %vm831_vm0, %v826_v60  ;;  %2122 = vmatprep.subr.bf16.mxu1 %v2623_v61  ;;  %v2369_v1 = vld [vmem:[#allocation6] sm:$0xff]   ;;  %v1988_v2 = vld [vmem:[#allocation4] ss:$0 sm:$0xff] }
 0x46d   : > { %2120 = vmatmul.mubr.msk.f32.vlgmr.msra.gmra.mxu0 %vm827_vm1, %v2844_v12  ;;  %2123 = vmatpush3.bf16.msra.mxu1 %v2366_v62  ;;  %v1035_v3 = vmul.f32 %v1988_v2, %v2844_v12 }
 0x46e   : > { %2124 = vmatprep.subr.bf16.mxu1 %v2623_v61  ;;  %2130 = vmatprep.subr.bf16.mxu0 %v2623_v61 }
 0x46f   : > { %2126 = vmatprep.mubr.msk.bf16.mxu1 %vm2624_vm2, %v2623_v61  ;;  %2131 = vmatpush3.bf16.msra.mxu0 %v2368_v0  ;;  %v1036_v4 = vsel %vm827_vm1, %v1035_v3, 0.0 }
 0x470   : > { %2132 = vmatprep.subr.bf16.mxu0 %v2623_v61  ;;  %2134 = vmatprep.mubr.msk.bf16.mxu0 %vm2624_vm2, %v2623_v61  ;;  %v1042_v28 = vld [vmem:[#allocation5] sm:$0xf] }
 0x471   : > { %2125 = vmatpush3.bf16.msra.mxu1 %v2367_v63  ;;  %1037 = vadd.xlane.f32.xlu0 %v1036_v4 }
 0x472   : > { %2138 = vmatprep.subr.bf16.mxu1 %v2623_v61 }
 0x473   : > { %2133 = vmatpush3.bf16.msra.mxu0 %v2369_v1 }
 0x474   : > { %2127 = vmatmul.mubr.msk.bf16.vlgmr.msra.gmra.mxu1 %vm926_vm3, %v2840_v6 }
 0x475   : > { %2140 = vmatprep.mubr.msk.bf16.mxu1 %vm2624_vm2, %v2623_v61 }
 0x4fa   : > { %v1038_v19 = vpop.xlane.xlu0 %1037 }
 0x52d   : > { %v901_v5 = vpop.f32.mrf.mxu0 }
 0x52e   : > { %v905_v7 = vpack.c.bf16 %v901_v5, %v901_v5 }
 0x52f   : > { %v2121_v8 = vpop.f32.mrf.mxu0 }
 0x530   : > { %2135 = vmatmul.mubr.msk.bf16.vlgmr.msra.gmra.mxu0 %vm926_vm3, %v905_v7 }
 0x534   : > { %v964_v10 = vpop.f32.mrf.mxu1 }
 0x536   : > { %v2128_v11 = vpop.f32.mrf.mxu1 }
 0x538   : > { %v967_v13 = vpop.f32.mrf.mxu1 }
 0x53a   : > { %v2129_v14 = vpop.f32.mrf.mxu1 }
 0x5f0   : > { %v1019_v15 = vpop.f32.mrf.mxu0 }
 0x5f1   : > { %v1020_v16 = vadd.f32 %v1019_v15, %v964_v10 }
 0x5f2   : > { %v2136_v17 = vpop.f32.mrf.mxu0 }
 0x5f3   : > { %v1026_v18 = vmul.f32 0.2, %v1020_v16  ;;  %vm1025_vm4 = vcmp.ge.f32.partialorder %v1020_v16, 0.0 }
 0x5f4   : > { %v1022_v20 = vpop.f32.mrf.mxu0 }
 0x5f5   : > { %v1027_v21 = vsel %vm1025_vm4, %v1020_v16, %v1026_v18 }
 0x5f6   : > { %v1039_v22 = vsub.f32 %v1027_v21, %v1038_v19  ;;  %v2137_v23 = vpop.f32.mrf.mxu0 }
 0x5f8   : > { %v1040_v24 = vmul.f32 1.442695, %v1039_v22 }
 0x5fa   : > { %2370 = vpow2.f32 %v1040_v24 }
 0x607   : > { %v2371_v25 = vpop.eup %2370 }
 0x608   : > { %v1043_v26 = vpack.c.bf16 %v2371_v25, %v2371_v25 }
 0x60a   : > { %v1049_v27 = vsel %vm831_vm0, %v1043_v26, 0 }
 0x60b   : > { %2139 = vmatpush3.bf16.msra.mxu1 %v1049_v27 }
 0x60e   : > { %2141 = vmatmul.mubr.msk.bf16.vlgmr.msra.gmra.mxu1 %vm1044_vm5, %v2842_v9 }
 0x6ce   : > { %v1085_v29 = vpop.f32.mrf.mxu1 }
 0x6cf   : > { %v1091_v30 = vadd.f32 %v1085_v29, %v1042_v28 }
 0x6d0   : > { %v2142_v31 = vpop.f32.mrf.mxu1 }
 0x6d1   : > { %1092 = vst [vmem:[#allocation5] sm:$0xf] %v1091_v30 }
 0x6d2   : > { %v1088_v32 = vpop.f32.mrf.mxu1 }
 0x6d4   : > { %v2143_v33 = vpop.f32.mrf.mxu1 }
 0x6d5 PF: > { %p1990_p10 = scmp.ne.s32.totalorder %s2594_s25, 3 }
 0x6d6   : > { %p1991_p13 = scmp.ne.s32.totalorder (!%p1990_p10), %s2590_s24, 0 }
 0x6d7   : > { %1096 = sbr.rel (%p1990_p10) target bundleno = 2984 (0xba8), region = 104 }
 0x6dc   : > { %1100 = sbr.rel (%p1991_p13) target bundleno = 1763 (0x6e3), region = 108 }
 0x6e1   : > { %vm1101_vm6 = vcmask 257024   ;;  %v2625_v34 = vmov 0.0  }
 0x6e2   : > { %1102 = vst.msk [vmem:[#allocation3] sm:$0xf] %vm1101_vm6, %v2625_v34 }
 0x6e3 PF: > { %v1103_v35 = vld [vmem:[#allocation2] sm:$0xf]  ;;  %vm1108_vm7 = vcmask 1043456   ;;  %vm1104_vm8 = vcmask 31744   ;;  %v2626_v36 = vmov 0.0   ;;  %vm2627_vm9 = vmmov 0  }
 0x6e4   : > { %2144 = vmatprep.subr.mxu0 %v2626_v36  ;;  %2146 = vmatprep.mubr.msk.f32.mxu0 %vm2627_vm9, %v2626_v36  ;;  %v2372_v37 = vld [vmem:[#allocation9 + $0x8] sm:$0xff]   ;;  %v2373_v38 = vld [vmem:[#allocation9] sm:$0xff]   ;;  %vm1203_vm10 = vcmask 261120   ;;  %v2374_v39 = vld [vmem:[#allocation6 + $0x8] sm:$0xff]   ;;  %vm1665_vm12 = vcmask 64512   ;;  %vm1713_vm13 = vcmask 257024  }
 0x6e5   : > { %2145 = vmatpush3.msk.msra.mxu0 %vm1108_vm7, %v1103_v35  ;;  %2149 = vmatprep.subr.bf16.mxu1 %v2626_v36  ;;  %v2375_v40 = vld [vmem:[#allocation6] sm:$0xff]   ;;  %v1319_v41 = vld [vmem:[#allocation5] sm:$0xf]  ;;  %v2000_v42 = vld [vmem:[#allocation4] ss:$0 sm:$0xff]  ;;  %p2023_p4 = scmp.ne.s32.totalorder %s2590_s24, 1 }
 0x6e6   : > { %2147 = vmatmul.mubr.msk.f32.vlgmr.msra.gmra.mxu0 %vm1104_vm8, %v2844_v12  ;;  %2150 = vmatpush3.bf16.msra.mxu1 %v2372_v37  ;;  %v1312_v43 = vmul.f32 %v2000_v42, %v2844_v12  ;;  %v2376_v45 = vld [vmem:[%s3062_s7 + $0x38] sm:$0xff]   ;;  %v2377_v52 = vld [vmem:[%s3062_s7 + $0x30] sm:$0xff]   ;;  %v2378_v53 = vld [vmem:[%s3062_s7 + $0x28] sm:$0xff]  }
 0x6e7   : > { %2151 = vmatprep.subr.bf16.mxu1 %v2626_v36  ;;  %2153 = vmatprep.mubr.msk.bf16.mxu1 %vm2627_vm9, %v2626_v36  ;;  %v2379_v56 = vld [vmem:[%s3062_s7 + $0x20] sm:$0xff]   ;;  %v2380_v57 = vld [vmem:[%s3062_s7 + $0x18] sm:$0xff]   ;;  %v2381_v58 = vld [vmem:[%s3059_s4 + $0x8] sm:$0xff]  }
 0x6e8   : > { %2157 = vmatprep.subr.bf16.mxu0 %v2626_v36  ;;  %2161 = vmatprep.mubr.msk.bf16.mxu0 %vm2627_vm9, %v2626_v36  ;;  %v1313_v44 = vsel %vm1104_vm8, %v1312_v43, 0.0  ;;  %v2383_v59 = vld [vmem:[%s3059_s4] sm:$0xff]   ;;  %v2382_v60 = vld [vmem:[%s3062_s7 + $0x10] sm:$0xff]   ;;  %v2384_v61 = vld [vmem:[%s3062_s7 + $0x8] sm:$0xff]  }
 0x6e9   : > { %2158 = vmatpush3.bf16.msra.mxu0 %v2374_v39  ;;  %1314 = vadd.xlane.f32.xlu0 %v1313_v44  ;;  %v2385_v62 = vld [vmem:[%s3062_s7] sm:$0xff]   ;;  %v2386_v63 = vld [vmem:[%s3063_s8 + $0x38] sm:$0xff]   ;;  %v2388_v0 = vld [vmem:[%s3063_s8 + $0x28] sm:$0xff]  }
 0x6ea   : > { %2152 = vmatpush3.bf16.msra.mxu1 %v2373_v38  ;;  %2159 = vmatprep.subr.bf16.mxu0 %v2626_v36  ;;  %v2389_v1 = vld [vmem:[%s3063_s8 + $0x20] sm:$0xff]   ;;  %v2390_v2 = vld [vmem:[%s3063_s8 + $0x18] sm:$0xff]   ;;  %v2391_v3 = vld [vmem:[%s3063_s8 + $0x10] sm:$0xff]  }
 0x6eb   : > { %2165 = vmatprep.subr.mxu1 %v2626_v36  ;;  %v2392_v4 = vld [vmem:[%s3063_s8 + $0x8] sm:$0xff]   ;;  %v2393_v27 = vld [vmem:[%s3063_s8] sm:$0xff]  }
 0x6ed   : > { %2154 = vmatmul.mubr.msk.bf16.vlgmr.msra.gmra.mxu1 %vm1203_vm10, %v2840_v6  ;;  %2160 = vmatpush3.bf16.msra.mxu0 %v2375_v40  ;;  %v1663_v40 = vld [vmem:[#allocation3] sm:$0xf] }
 0x6ee   : > { %2167 = vmatprep.mubr.msk.f32.mxu1 %vm2627_vm9, %v2626_v36  ;;  %2170 = vmatprep.subr.bf16.mxu0 %v2626_v36 }
 0x6ef   : > { %2166 = vmatpush3.msk.msra.mxu1 %vm1108_vm7, %v1319_v41 }
 0x6f0   : > { %2178 = vmatprep.subr.bf16.mxu1 %v2626_v36 }
 0x6f5   : > { %2168 = vmatmul.mubr.msk.f32.vlgmr.msra.gmra.mxu1 %vm1104_vm8, %v2844_v12 }
 0x6f6   : > { %2194 = vmatprep.mubr.msk.bf16.mxu1 %vm2627_vm9, %v2626_v36  ;;  %2179 = vmatpush3.bf16.msra.mxu1 %v2376_v45 }
 0x6f7   : > { %2180 = vmatprep.subr.bf16.mxu1 %v2626_v36 }
 0x6fa   : > { %2181 = vmatpush3.bf16.msra.mxu1 %v2377_v52 }
 0x6fb   : > { %2182 = vmatprep.subr.bf16.mxu1 %v2626_v36 }
 0x6fe   : > { %2183 = vmatpush3.bf16.msra.mxu1 %v2378_v53 }
 0x6ff   : > { %2184 = vmatprep.subr.bf16.mxu1 %v2626_v36 }
 0x702   : > { %2185 = vmatpush3.bf16.msra.mxu1 %v2379_v56 }
 0x703   : > { %2186 = vmatprep.subr.bf16.mxu1 %v2626_v36 }
 0x706   : > { %2187 = vmatpush3.bf16.msra.mxu1 %v2380_v57 }
 0x707   : > { %2188 = vmatprep.subr.bf16.mxu1 %v2626_v36 }
 0x70a   : > { %2189 = vmatpush3.bf16.msra.mxu1 %v2382_v60 }
 0x70b   : > { %2190 = vmatprep.subr.bf16.mxu1 %v2626_v36 }
 0x70e   : > { %2191 = vmatpush3.bf16.msra.mxu1 %v2384_v61 }
 0x70f   : > { %2192 = vmatprep.subr.bf16.mxu1 %v2626_v36 }
 0x712   : > { %2193 = vmatpush3.bf16.msra.mxu1 %v2385_v62 }
 0x713   : > { %2218 = vmatprep.subr.bf16.mxu1 %v2626_v36 }
 0x772   : > { %v1315_v11 = vpop.xlane.xlu0 %1314 }
 0x7a6   : > { %v1178_v46 = vpop.f32.mrf.mxu0 }
 0x7a7   : > { %v1182_v47 = vpack.c.bf16 %v1178_v46, %v1178_v46 }
 0x7a8   : > { %v2148_v48 = vpop.f32.mrf.mxu0 }
 0x7a9   : > { %2162 = vmatmul.mubr.msk.bf16.vlgmr.msra.gmra.mxu0 %vm1203_vm10, %v1182_v47 }
 0x7aa   : > { %2174 = vmatprep.mubr.msk.bf16.mxu0 %vm2627_vm9, %v2626_v36  ;;  %2171 = vmatpush3.bf16.msra.mxu0 %v2381_v58 }
 0x7ab   : > { %2172 = vmatprep.subr.bf16.mxu0 %v2626_v36 }
 0x7ad   : > { %v1241_v12 = vpop.f32.mrf.mxu1 }
 0x7ae   : > { %2173 = vmatpush3.bf16.msra.mxu0 %v2383_v59 }
 0x7af   : > { %v2155_v49 = vpop.f32.mrf.mxu1  ;;  %2198 = vmatprep.subr.bf16.mxu0 %v2626_v36 }
 0x7b1   : > { %v1244_v50 = vpop.f32.mrf.mxu1  ;;  %2175 = vmatmul.mubr.msk.bf16.vlgmr.msra.gmra.mxu0 %vm1203_vm10, %v2840_v6  ;;  %v2387_v6 = vld [vmem:[%s3063_s8 + $0x30] sm:$0xff]  }
 0x7b2   : > { %2214 = vmatprep.mubr.msk.bf16.mxu0 %vm2627_vm9, %v2626_v36  ;;  %2199 = vmatpush3.bf16.msra.mxu0 %v2386_v63 }
 0x7b3   : > { %v2156_v51 = vpop.f32.mrf.mxu1  ;;  %2200 = vmatprep.subr.bf16.mxu0 %v2626_v36 }
 0x7b5   : > { %v1389_v54 = vpop.f32.mrf.mxu1 }
 0x7b6   : > { %2201 = vmatpush3.bf16.msra.mxu0 %v2387_v6  ;;  %v1390_v14 = vadd.f32 1e-16, %v1389_v54 }
 0x7b7   : > { %v2169_v55 = vpop.f32.mrf.mxu1  ;;  %2202 = vmatprep.subr.bf16.mxu0 %v2626_v36 }
 0x7b8   : > { %2394 = vrcp.f32 %v1390_v14 }
 0x7ba   : > { %2203 = vmatpush3.bf16.msra.mxu0 %v2388_v0 }
 0x7bb   : > { %2204 = vmatprep.subr.bf16.mxu0 %v2626_v36 }
 0x7be   : > { %2205 = vmatpush3.bf16.msra.mxu0 %v2389_v1 }
 0x7bf   : > { %2206 = vmatprep.subr.bf16.mxu0 %v2626_v36 }
 0x7c2   : > { %2207 = vmatpush3.bf16.msra.mxu0 %v2390_v2 }
 0x7c3   : > { %2208 = vmatprep.subr.bf16.mxu0 %v2626_v36 }
 0x7c5   : > { %v2395_v19 = vpop.eup %2394 }
 0x7c6   : > { %2209 = vmatpush3.bf16.msra.mxu0 %v2391_v3 }
 0x7c7   : > { %2210 = vmatprep.subr.bf16.mxu0 %v2626_v36 }
 0x7ca   : > { %2211 = vmatpush3.bf16.msra.mxu0 %v2392_v4 }
 0x7cb   : > { %2212 = vmatprep.subr.bf16.mxu0 %v2626_v36 }
 0x7ce   : > { %2213 = vmatpush3.bf16.msra.mxu0 %v2393_v27 }
 0x869   : > { %v1296_v5 = vpop.f32.mrf.mxu0 }
 0x86a   : > { %v1297_v7 = vadd.f32 %v1296_v5, %v1241_v12 }
 0x86b   : > { %v2163_v8 = vpop.f32.mrf.mxu0 }
 0x86c   : > { %v1303_v10 = vmul.f32 0.2, %v1297_v7  ;;  %vm1302_vm11 = vcmp.ge.f32.partialorder %v1297_v7, 0.0 }
 0x86d   : > { %v1299_v13 = vpop.f32.mrf.mxu0 }
 0x86e   : > { %v1304_v15 = vsel %vm1302_vm11, %v1297_v7, %v1303_v10 }
 0x86f   : > { %v1316_v16 = vsub.f32 %v1304_v15, %v1315_v11  ;;  %v2164_v17 = vpop.f32.mrf.mxu0 }
 0x871   : > { %v1317_v18 = vmul.f32 1.442695, %v1316_v16  ;;  %v1446_v23 = vpop.f32.mrf.mxu0 }
 0x873   : > { %2396 = vpow2.f32 %v1317_v18  ;;  %v2176_v24 = vpop.f32.mrf.mxu0 }
 0x875   : > { %v1449_v25 = vpop.f32.mrf.mxu0 }
 0x877   : > { %v2177_v26 = vpop.f32.mrf.mxu0 }
 0x880   : > { %v2397_v20 = vpop.eup %2396 }
 0x881   : > { %v1394_v21 = vmul.f32 %v2397_v20, %v2395_v19 }
 0x883   : > { %1395 = vst [vmem:[%s483_s27] sm:$0xff] %v1394_v21  ;;  %v1452_v22 = vpack.c.bf16 %v1394_v21, %v1394_v21 }
 0x885   : > { %2195 = vmatmul.mubr.bf16.vlgmr.msra.gmra.mxu1 %v1452_v22 }
 0x886   : > { %2220 = vmatprep.mubr.msk.bf16.mxu1 %vm2627_vm9, %v2626_v36 }
 0x945   : > { %v1551_v28 = vpop.f32.mrf.mxu1 }
 0x946   : > { %v1557_v29 = vmul.f32 %v1551_v28, %v1446_v23 }
 0x947   : > { %v2196_v30 = vpop.f32.mrf.mxu1 }
 0x948   : > { %v1558_v31 = vpack.c.bf16 %v1557_v29, %v1557_v29 }
 0x949   : > { %v1554_v32 = vpop.f32.mrf.mxu1 }
 0x94a   : > { %2215 = vmatmul.mubr.bf16.vlgmr.msra.gmra.mxu0 %v1558_v31 }
 0x94b   : > { %v2197_v33 = vpop.f32.mrf.mxu1 }
 0xa0a   : > { %v1657_v34 = vpop.f32.mrf.mxu0 }
 0xa0b   : > { %v1664_v35 = vpack.c.bf16 %v1657_v34, %v1657_v34 }
 0xa0c   : > { %v2216_v37 = vpop.f32.mrf.mxu0 }
 0xa0d   : > { %v1670_v36 = vsel %vm1108_vm7, %v1664_v35, 0 }
 0xa0e   : > { %v1660_v38 = vpop.f32.mrf.mxu0  ;;  %2219 = vmatpush3.bf16.msra.mxu1 %v1670_v36 }
 0xa10   : > { %v2217_v39 = vpop.f32.mrf.mxu0 }
 0xa11   : > { %2221 = vmatmul.mubr.msk.bf16.vlgmr.msra.gmra.mxu1 %vm1665_vm12, %v2842_v9 }
 0xad1   : > { %v1706_v41 = vpop.f32.mrf.mxu1 }
 0xad2   : > { %v1712_v42 = vadd.f32 %v1706_v41, %v1663_v40 }
 0xad3   : > { %v2222_v43 = vpop.f32.mrf.mxu1  ;;  %1718 = sbr.rel (%p2023_p4) target bundleno = 2984 (0xba8), region = 112 }
 0xad4   : > { %1714 = vst.msk [vmem:[#allocation3] sm:$0xf] %vm1713_vm13, %v1712_v42 }
 0xad5   : > { %v1709_v44 = vpop.f32.mrf.mxu1 }
 0xad7   : > { %v2223_v45 = vpop.f32.mrf.mxu1 }
 0xad8   : > { %v2398_v46 = vld [vmem:[#allocation11 + $0x8] sm:$0xff]   ;;  %v2628_v47 = vmov 0.0   ;;  %v2399_v48 = vld [vmem:[#allocation11] sm:$0xff]   ;;  %vm2629_vm14 = vmmov 0   ;;  %v2024_v49 = vld [vmem:[%s3065_s10] ss:$0 sm:$0xff] }
 0xad9   : > { %2224 = vmatprep.subr.bf16.mxu0 %v2628_v47  ;;  %2228 = vmatprep.mubr.msk.bf16.mxu0 %vm2629_vm14, %v2628_v47 }
 0xada   : > { %2225 = vmatpush3.bf16.msra.mxu0 %v2398_v46 }
 0xadb   : > { %v1719_v9 = vld [vmem:[#allocation3] sm:$0xf]  ;;  %2226 = vmatprep.subr.bf16.mxu0 %v2628_v47 }
 0xadc   : > { %v1720_v12 = vpack.c.bf16 %v1719_v9, %v1719_v9 }
 0xade   : > { %2227 = vmatpush3.bf16.msra.mxu0 %v2399_v48 }
 0xae1   : > { %2229 = vmatmul.mubr.msk.bf16.vlgmr.msra.gmra.mxu0 %vm1203_vm10, %v1720_v12 }
 0xba1   : > { %v1781_v50 = vpop.f32.mrf.mxu0 }
 0xba2   : > { %v1782_v51 = vadd.f32 %v2024_v49, %v1781_v50 }
 0xba3   : > { %v2230_v52 = vpop.f32.mrf.mxu0 }
 0xba4   : > { %1787 = vst.msk [vmem:[#allocation12] sm:$0xf] %vm1713_vm13, %v1782_v51 }
 0xba5   : > { %v1784_v53 = vpop.f32.mrf.mxu0 }
 0xba7   : > { %v2231_v54 = vpop.f32.mrf.mxu0 }
 0xba8 PF: > { %s2630_s13 = smov [#allocation12]   ;;  %s2030_s20 = sshll.u32 %s2590_s24, 7 }
 0xba9   : > { %s1800_s29 = sshll.u32 %s2630_s13, 4  ;;  %s1801_s29 = int_to_ptr.vmem [resolvable:$true] %s1800_s29 }
 0xbaa   : > { %s2478_s21 = scalar_lea.vmem %s1801_s29, 64  ;;  %p2485_p0 = scmp.lt.s32.totalorder %s1801_s29, %s1801_s29 }
 0xbab   : > { %p2479_p3 = scmp.ne.s32.totalorder %s1801_s29, %s2478_s21  ;;  %p2486_p11 = scmp.lt.s32.totalorder %s2478_s21, %s2478_s21 }
 0xbad   : > { %p2480_p5 = pnand %p2479_p3, %p2744_p2  ;;  %p2487_p12 = por %p2486_p11, %p2485_p0 }
 0xbaf   : > { %p2481_p7 = pneg %p2480_p5 }
 0xbb1   : > { %p2488_p1 = pnand %p2487_p12, %p2481_p7 }
 0xbb3   : > { %2491 = shalt.err (!%p2488_p1)
}
 0xbb4   : > { %2245 = dma.vmem_to_hbm [thread:$0]  (%p2744_p2), %s1801_s29, 64, %s3066_s11, [#allocation8]  }
 0xbb5   : > { %s1811_s30 = scalar_lea.hbm %s3067_s12, %s2030_s20  ;;  %s1813_s26 = sshll.u32 %s483_s27, 4  ;;  %s1814_s26 = int_to_ptr.vmem [resolvable:$true] %s1813_s26 }
 0xbb6   : > { %s1789_s23 = scalar_lea.sflag [#allocation14], %s481_s14  ;;  %s2502_s15 = scalar_lea.vmem %s1814_s26, 128 }
 0xbb7   : > { %p2503_p6 = scmp.ne.s32.totalorder %s1814_s26, %s2502_s15  ;;  %p3091_p8 = scmp.ne.s32.totalorder %s3082_s18, 0 }
 0xbb8   : > { %s2631_s13 = smov [#allocation13]  }
 0xbb9   : > { %p2504_p9 = pnand %p2503_p6, %p3091_p8  ;;  %s2506_s21 = sshll.u32 %s2631_s13, 4  ;;  %s2507_s21 = int_to_ptr.vmem [resolvable:$false] %s2506_s21 }
 0xbba   : > { %s2508_s19 = scalar_lea.vmem %s2507_s21, 256  ;;  %p2509_p13 = scmp.lt.s32.totalorder %s1814_s26, %s2507_s21 }
 0xbbb   : > { %p2505_p10 = pneg %p2504_p9  ;;  %p2510_p4 = scmp.lt.s32.totalorder %s2508_s19, %s2502_s15 }
 0xbbd   : > { %p2511_p3 = por %p2510_p4, %p2509_p13 }
 0xbbf   : > { %p2512_p5 = pnand %p2511_p3, %p2505_p10 }
 0xbc1   : > { %2515 = shalt.err (!%p2512_p5)
}
 0xbc2   : > { %s2516_s29 = scalar_lea.hbm %s1811_s30, 128  ;;  %s2520_s27 = scalar_lea.hbm %s3067_s12, 256 }
 0xbc3   : > { %p2517_p7 = scmp.ne.s32.totalorder %s1811_s30, %s2516_s29  ;;  %p2521_p12 = scmp.lt.s32.totalorder %s1811_s30, %s3067_s12 }
 0xbc4   : > { %p2522_p1 = scmp.lt.s32.totalorder %s2520_s27, %s2516_s29 }
 0xbc5   : > { %p2518_p0 = pnand %p2517_p7, %p3091_p8 }
 0xbc6   : > { %p2523_p6 = por %p2522_p1, %p2521_p12 }
 0xbc7   : > { %p2519_p11 = pneg %p2518_p0 }
 0xbc9   : > { %p2524_p9 = pnand %p2523_p6, %p2519_p11 }
 0xbcb   : > { %2527 = shalt.err (!%p2524_p9)
}
 0xbcc   : > { %2246 = dma.vmem_to_hbm [thread:$0]  (%p3091_p8), %s1814_s26, 128, %s1811_s30, %s1789_s23  }
 0xbcd   : > { %2569 = dma.done.wait (%p2744_p2), [#allocation8], 64  }
 0xbce   : > { %2571 = vsyncadd (%p2744_p2), [#allocation8], 4294967232 }
 0xbcf PF: > { %s3092_s24 = sld [smem:[#allocation19_spill]]  ;;  %p2272_p10 = scmp.ge.s32.totalorder %s2606_s28, 2 }
 0xbd0   : > { %s3093_s25 = sld [smem:[#allocation26_spill]] }
 0xbd5   : > { %s1829_s15 = sand.u32 1, %s3092_s24  }
 0xbd6   : > { %p3094_p13 = scmp.ne.s32.totalorder %s3093_s25, 0  ;;  %s1830_s13 = scalar_lea.sflag [#allocation14], %s1829_s15 }
 0xbd8   : > { %p2261_p4 = pnand %p2272_p10, %p3094_p13 }
 0xbda   : > { %p2262_p3 = pneg %p2261_p4 }
 0xbdc   : > { %2573 = dma.done.wait (%p2262_p3), %s1830_s13, 128  }
 0xbdd   : > { %2575 = vsyncadd (%p2262_p3), %s1830_s13, 4294967168  ;;  %s29_s28 = sadd.s32 1, %s2606_s28   ;;  %s3095_s18 = sld [smem:[#allocation20_spill]] }
 0xbde   : > { %p26_p8 = scmp.ge.s32.totalorder %s29_s28, 10   ;;  %s3096_s23 = sld [smem:[#allocation25_spill]] }
 0xbdf   : > { %s3097_s24 = sld [smem:[#allocation21_spill]]  ;;  %s3101_s21 = smov %s2582_s22 }
 0xbe0   : > { %s3098_s25 = sld [smem:[#allocation22_spill]]  ;;  %28 = sbr.rel (!%p26_p8) target bundleno = 10 (0xa), region = 163 }
 0xbe1   : > { %s3099_s26 = sld [smem:[#allocation23_spill]] }
 0xbe2   : > { %s3100_s27 = sld [smem:[#allocation24_spill]] }
 0xbe3   : > { %s3102_s22 = smov %s3095_s18 }
 0xbe5   :  { %1835 = vsyncpa [#allocation7], 1 }
 0xbe6   :  { %1837 = vsyncpa [#allocation7 + $0x1], 1 }
 0xbe7   :  { %1838 = vsyncpa [#allocation10], 1 }
 0xbe8   :  { %1839 = vsyncpa [#allocation8], 1 }
 0xbe9   :  { %1841 = vsyncpa [#allocation8 + $0x1], 1 }
 0xbea   :  { %1842 = vsyncpa [#allocation14], 1 }
 0xbeb   :  { %1844 = vsyncpa [#allocation14 + $0x1], 1 }

</bundles_post_ra>
